<compile_context>
chip_gen: v7x
topology: tpu7x:2x2x1
jax: 0.10.0
libtpu: 0.0.40
codegen_flags: <defaults>
</compile_context>

<pallas_src>
import functools
import math

import jax
import jax.numpy as jnp
from jax.experimental import pallas as pl
from jax.experimental.pallas import tpu as pltpu


def gru_kernel(x_ref, w_ih_ref, w_hh_ref, b_ih_ref, b_hh_ref, out_ref, *,
               seq_len, batch):
    """Full GRU sequence in one kernel invocation.

    x_ref:    (S*B, H)  inputs, time-major rows (row t*B + b == x[t, b]).
    w_ih_ref: (3, H, H) per-gate transposed input weights  W_i{r,z,n}^T.
    w_hh_ref: (3, H, H) per-gate transposed hidden weights W_h{r,z,n}^T.
    b_ih_ref: (3, 1, H) per-gate input biases.
    b_hh_ref: (3, 1, H) per-gate hidden biases.
    out_ref:  (S*B, H)  outputs (row t*B + b == h_t[b]).
    """
    hidden = x_ref.shape[-1]
    x2d = x_ref[...]                               # (S*B, H)

    # ---- Hoisted input projections: one lane-aligned matmul per gate over the
    # whole sequence, biases folded in once (NOT inside the recurrence). ----
    gi_r = jnp.dot(x2d, w_ih_ref[0], preferred_element_type=jnp.float32) + b_ih_ref[0]
    gi_z = jnp.dot(x2d, w_ih_ref[1], preferred_element_type=jnp.float32) + b_ih_ref[1]
    gi_n = jnp.dot(x2d, w_ih_ref[2], preferred_element_type=jnp.float32) + b_ih_ref[2]

    # Hidden weights loaded once; hidden-bias broadcasts hoisted out of the loop.
    w_hr = w_hh_ref[0]
    w_hz = w_hh_ref[1]
    w_hn = w_hh_ref[2]
    b_hr = jnp.broadcast_to(b_hh_ref[0], (batch, hidden))
    b_hz = jnp.broadcast_to(b_hh_ref[1], (batch, hidden))
    b_hn = jnp.broadcast_to(b_hh_ref[2], (batch, hidden))

    # Zero initial hidden state (matches torch.zeros(1, batch, hidden)).
    h = jnp.zeros((batch, hidden), jnp.float32)

    # Sequential recurrence, fully unrolled at trace time: static 8-aligned
    # sublane slices, no per-step grid/DMA overhead, no cross-lane shuffles.
    for t in range(seq_len):
        lo = t * batch
        gh_r = jnp.dot(h, w_hr, preferred_element_type=jnp.float32) + b_hr
        gh_z = jnp.dot(h, w_hz, preferred_element_type=jnp.float32) + b_hz
        gh_n = jnp.dot(h, w_hn, preferred_element_type=jnp.float32) + b_hn

        r = jax.nn.sigmoid(gi_r[lo:lo + batch] + gh_r)
        z = jax.nn.sigmoid(gi_z[lo:lo + batch] + gh_z)
        n = jnp.tanh(gi_n[lo:lo + batch] + r * gh_n)
        h = (1.0 - z) * n + z * h

        out_ref[lo:lo + batch, :] = h.astype(out_ref.dtype)


def session_encoder_forward(x, w_ih, w_hh, b_ih, b_hh):
    """Pallas implementation of SessionEncoder.forward.

    x:     (S, B, H) float32
    w_ih:  (3H, H)  PyTorch weight_ih_l0  (gate order r|z|n)
    w_hh:  (3H, H)  PyTorch weight_hh_l0
    b_ih:  (3H,)    PyTorch bias_ih_l0
    b_hh:  (3H,)    PyTorch bias_hh_l0
    returns (output (S,B,H), hidden (1,B,H))
    """
    S, B, H = x.shape

    # Wrapper-side layout prep (pure XLA, cheap): time-major 2-D input and
    # per-gate, pre-transposed weight tiles so every in-kernel matmul output
    # is lane-aligned (no r|z|n slicing inside the recurrence).
    x2d = x.reshape(S * B, H)
    w_ih_g = jnp.transpose(w_ih.reshape(3, H, H), (0, 2, 1))   # (3, H, H) = W_i*^T
    w_hh_g = jnp.transpose(w_hh.reshape(3, H, H), (0, 2, 1))   # (3, H, H) = W_h*^T
    b_ih_g = b_ih.reshape(3, 1, H)
    b_hh_g = b_hh.reshape(3, 1, H)

    kernel = functools.partial(gru_kernel, seq_len=S, batch=B)

    out2d = pl.pallas_call(
        kernel,
        out_shape=jax.ShapeDtypeStruct((S * B, H), x.dtype),
        grid_spec=pltpu.PrefetchScalarGridSpec(
            num_scalar_prefetch=0,
            grid=(1,),                                           # single invocation
            in_specs=[
                pl.BlockSpec((S * B, H), lambda i: (0, 0)),      # x (whole sequence)
                pl.BlockSpec((3, H, H), lambda i: (0, 0, 0)),    # W_ih^T per gate
                pl.BlockSpec((3, H, H), lambda i: (0, 0, 0)),    # W_hh^T per gate
                pl.BlockSpec((3, 1, H), lambda i: (0, 0, 0)),    # b_ih per gate
                pl.BlockSpec((3, 1, H), lambda i: (0, 0, 0)),    # b_hh per gate
            ],
            out_specs=pl.BlockSpec((S * B, H), lambda i: (0, 0)),
        ),
        compiler_params=pltpu.CompilerParams(
            dimension_semantics=("arbitrary",)),                 # true recurrence
    )(x2d, w_ih_g, w_hh_g, b_ih_g, b_hh_g)

    out = out2d.reshape(S, B, H)
    hidden = out[S - 1:S]           # (1, B, H): final hidden == out[-1]
    # TODO(synk): PyTorch module mutates self.last_hidden (module state); the
    # stateless kernel always starts from the zero init and returns `hidden`
    # for the caller to thread forward.
    return out, hidden


def gru_reference(x, w_ih, w_hh, b_ih, b_hh):
    """Pure-JAX reference of PyTorch single-layer GRU with zero init hidden."""
    S, B, H = x.shape
    h0 = jnp.zeros((B, H), jnp.float32)

    def step(h_prev, x_t):
        gi = x_t @ w_ih.T + b_ih
        gh = h_prev @ w_hh.T + b_hh
        i_r, i_z, i_n = gi[:, :H], gi[:, H:2 * H], gi[:, 2 * H:]
        h_r, h_z, h_n = gh[:, :H], gh[:, H:2 * H], gh[:, 2 * H:]
        r = jax.nn.sigmoid(i_r + h_r)
        z = jax.nn.sigmoid(i_z + h_z)
        n = jnp.tanh(i_n + r * h_n)
        h = (1.0 - z) * n + z * h_prev
        return h, h

    h_last, outs = jax.lax.scan(step, h0, x)
    return outs, h_last[None]


if __name__ == "__main__":
    hidden_size = 32
    batch_size = 8
    seq_len = 8

    key = jax.random.PRNGKey(0)
    kx, k1, k2, k3, k4 = jax.random.split(key, 5)

    # Deterministic param init, PyTorch-style uniform(-1/sqrt(H), 1/sqrt(H)).
    bound = 1.0 / math.sqrt(hidden_size)
    w_ih = jax.random.uniform(k1, (3 * hidden_size, hidden_size), jnp.float32, -bound, bound)
    w_hh = jax.random.uniform(k2, (3 * hidden_size, hidden_size), jnp.float32, -bound, bound)
    b_ih = jax.random.uniform(k3, (3 * hidden_size,), jnp.float32, -bound, bound)
    b_hh = jax.random.uniform(k4, (3 * hidden_size,), jnp.float32, -bound, bound)

    x = jax.random.normal(kx, (seq_len, batch_size, hidden_size), jnp.float32)

    out, hn = session_encoder_forward(x, w_ih, w_hh, b_ih, b_hh)
    jax.block_until_ready((out, hn))

    out_ref, hn_ref = gru_reference(x, w_ih, w_hh, b_ih, b_hh)

    assert out.shape == (seq_len, batch_size, hidden_size)
    assert hn.shape == (1, batch_size, hidden_size)
    assert jnp.allclose(out, out_ref, atol=1e-5, rtol=1e-5)
    assert jnp.allclose(hn, hn_ref, atol=1e-5, rtol=1e-5)
    print("KERNEL_OK")
</pallas_src>

<mosaic_0001>
module attributes {stable_mosaic.version = 11 : i64} {
  func.func @gru_kernel(%arg0: i32, %arg1: memref<64x32xf32, #tpu.memory_space<vmem>>, %arg2: memref<3x32x32xf32, #tpu.memory_space<vmem>>, %arg3: memref<3x32x32xf32, #tpu.memory_space<vmem>>, %arg4: memref<3x1x32xf32, #tpu.memory_space<vmem>>, %arg5: memref<3x1x32xf32, #tpu.memory_space<vmem>>, %arg6: memref<64x32xf32, #tpu.memory_space<vmem>>) attributes {dimension_semantics = [#tpu.dimension_semantics<arbitrary>], iteration_bounds = array<i64: 1>, scalar_prefetch = 0 : i64, scratch_operands = 0 : i64, tpu.core_type = #tpu.core_type<tc>, window_params = [{pipeline_mode = #tpu.pipeline_mode<synchronous>, transform_indices = @transform_0, window_bounds = array<i64: 64, 32>}, {pipeline_mode = #tpu.pipeline_mode<synchronous>, transform_indices = @transform_1, window_bounds = array<i64: 3, 32, 32>}, {pipeline_mode = #tpu.pipeline_mode<synchronous>, transform_indices = @transform_2, window_bounds = array<i64: 3, 32, 32>}, {pipeline_mode = #tpu.pipeline_mode<synchronous>, transform_indices = @transform_3, window_bounds = array<i64: 3, 1, 32>}, {pipeline_mode = #tpu.pipeline_mode<synchronous>, transform_indices = @transform_4, window_bounds = array<i64: 3, 1, 32>}, {pipeline_mode = #tpu.pipeline_mode<synchronous>, transform_indices = @transform_5, window_bounds = array<i64: 64, 32>}]} {
    %c0 = arith.constant 0 : index
    %c0_0 = arith.constant 0 : index
    %0 = vector.load %arg1[%c0, %c0_0] : memref<64x32xf32, #tpu.memory_space<vmem>>, vector<64x32xf32>
    %c0_1 = arith.constant 0 : index
    %c0_2 = arith.constant 0 : index
    %c0_3 = arith.constant 0 : index
    %1 = vector.load %arg2[%c0_1, %c0_2, %c0_3] : memref<3x32x32xf32, #tpu.memory_space<vmem>>, vector<1x32x32xf32>
    %2 = vector.shape_cast %1 : vector<1x32x32xf32> to vector<32x32xf32>
    %cst = arith.constant dense<0.000000e+00> : vector<64x32xf32>
    %3 = tpu.matmul %0, %2, %cst {dimension_numbers = #tpu.dot_dimension_numbers<[1], [0], [0], [1], [0, 0, 1, 1], [], []>} : vector<64x32xf32>, vector<32x32xf32>, vector<64x32xf32> -> vector<64x32xf32>
    %c0_4 = arith.constant 0 : index
    %c0_5 = arith.constant 0 : index
    %c0_6 = arith.constant 0 : index
    %4 = vector.load %arg4[%c0_4, %c0_5, %c0_6] : memref<3x1x32xf32, #tpu.memory_space<vmem>>, vector<1x1x32xf32>
    %5 = vector.shape_cast %4 : vector<1x1x32xf32> to vector<1x32xf32>
    %6 = vector.broadcast %5 : vector<1x32xf32> to vector<64x32xf32>
    %7 = arith.addf %3, %6 : vector<64x32xf32>
    %c1 = arith.constant 1 : index
    %c0_7 = arith.constant 0 : index
    %c0_8 = arith.constant 0 : index
    %8 = vector.load %arg2[%c1, %c0_7, %c0_8] : memref<3x32x32xf32, #tpu.memory_space<vmem>>, vector<1x32x32xf32>
    %9 = vector.shape_cast %8 : vector<1x32x32xf32> to vector<32x32xf32>
    %cst_9 = arith.constant dense<0.000000e+00> : vector<64x32xf32>
    %10 = tpu.matmul %0, %9, %cst_9 {dimension_numbers = #tpu.dot_dimension_numbers<[1], [0], [0], [1], [0, 0, 1, 1], [], []>} : vector<64x32xf32>, vector<32x32xf32>, vector<64x32xf32> -> vector<64x32xf32>
    %c1_10 = arith.constant 1 : index
    %c0_11 = arith.constant 0 : index
    %c0_12 = arith.constant 0 : index
    %11 = vector.load %arg4[%c1_10, %c0_11, %c0_12] : memref<3x1x32xf32, #tpu.memory_space<vmem>>, vector<1x1x32xf32>
    %12 = vector.shape_cast %11 : vector<1x1x32xf32> to vector<1x32xf32>
    %13 = vector.broadcast %12 : vector<1x32xf32> to vector<64x32xf32>
    %14 = arith.addf %10, %13 : vector<64x32xf32>
    %c2 = arith.constant 2 : index
    %c0_13 = arith.constant 0 : index
    %c0_14 = arith.constant 0 : index
    %15 = vector.load %arg2[%c2, %c0_13, %c0_14] : memref<3x32x32xf32, #tpu.memory_space<vmem>>, vector<1x32x32xf32>
    %16 = vector.shape_cast %15 : vector<1x32x32xf32> to vector<32x32xf32>
    %cst_15 = arith.constant dense<0.000000e+00> : vector<64x32xf32>
    %17 = tpu.matmul %0, %16, %cst_15 {dimension_numbers = #tpu.dot_dimension_numbers<[1], [0], [0], [1], [0, 0, 1, 1], [], []>} : vector<64x32xf32>, vector<32x32xf32>, vector<64x32xf32> -> vector<64x32xf32>
    %c2_16 = arith.constant 2 : index
    %c0_17 = arith.constant 0 : index
    %c0_18 = arith.constant 0 : index
    %18 = vector.load %arg4[%c2_16, %c0_17, %c0_18] : memref<3x1x32xf32, #tpu.memory_space<vmem>>, vector<1x1x32xf32>
    %19 = vector.shape_cast %18 : vector<1x1x32xf32> to vector<1x32xf32>
    %20 = vector.broadcast %19 : vector<1x32xf32> to vector<64x32xf32>
    %21 = arith.addf %17, %20 : vector<64x32xf32>
    %c0_19 = arith.constant 0 : index
    %c0_20 = arith.constant 0 : index
    %c0_21 = arith.constant 0 : index
    %22 = vector.load %arg3[%c0_19, %c0_20, %c0_21] : memref<3x32x32xf32, #tpu.memory_space<vmem>>, vector<1x32x32xf32>
    %23 = vector.shape_cast %22 : vector<1x32x32xf32> to vector<32x32xf32>
    %c1_22 = arith.constant 1 : index
    %c0_23 = arith.constant 0 : index
    %c0_24 = arith.constant 0 : index
    %24 = vector.load %arg3[%c1_22, %c0_23, %c0_24] : memref<3x32x32xf32, #tpu.memory_space<vmem>>, vector<1x32x32xf32>
    %25 = vector.shape_cast %24 : vector<1x32x32xf32> to vector<32x32xf32>
    %c2_25 = arith.constant 2 : index
    %c0_26 = arith.constant 0 : index
    %c0_27 = arith.constant 0 : index
    %26 = vector.load %arg3[%c2_25, %c0_26, %c0_27] : memref<3x32x32xf32, #tpu.memory_space<vmem>>, vector<1x32x32xf32>
    %27 = vector.shape_cast %26 : vector<1x32x32xf32> to vector<32x32xf32>
    %c0_28 = arith.constant 0 : index
    %c0_29 = arith.constant 0 : index
    %c0_30 = arith.constant 0 : index
    %28 = vector.load %arg5[%c0_28, %c0_29, %c0_30] : memref<3x1x32xf32, #tpu.memory_space<vmem>>, vector<1x1x32xf32>
    %29 = vector.shape_cast %28 : vector<1x1x32xf32> to vector<1x32xf32>
    %30 = vector.shape_cast %29 : vector<1x32xf32> to vector<1x32xf32>
    %31 = vector.broadcast %30 : vector<1x32xf32> to vector<8x32xf32>
    %c1_31 = arith.constant 1 : index
    %c0_32 = arith.constant 0 : index
    %c0_33 = arith.constant 0 : index
    %32 = vector.load %arg5[%c1_31, %c0_32, %c0_33] : memref<3x1x32xf32, #tpu.memory_space<vmem>>, vector<1x1x32xf32>
    %33 = vector.shape_cast %32 : vector<1x1x32xf32> to vector<1x32xf32>
    %34 = vector.shape_cast %33 : vector<1x32xf32> to vector<1x32xf32>
    %35 = vector.broadcast %34 : vector<1x32xf32> to vector<8x32xf32>
    %c2_34 = arith.constant 2 : index
    %c0_35 = arith.constant 0 : index
    %c0_36 = arith.constant 0 : index
    %36 = vector.load %arg5[%c2_34, %c0_35, %c0_36] : memref<3x1x32xf32, #tpu.memory_space<vmem>>, vector<1x1x32xf32>
    %37 = vector.shape_cast %36 : vector<1x1x32xf32> to vector<1x32xf32>
    %38 = vector.shape_cast %37 : vector<1x32xf32> to vector<1x32xf32>
    %39 = vector.broadcast %38 : vector<1x32xf32> to vector<8x32xf32>
    %cst_37 = arith.constant 0.000000e+00 : f32
    %40 = vector.broadcast %cst_37 : f32 to vector<8x32xf32>
    %cst_38 = arith.constant dense<0.000000e+00> : vector<8x32xf32>
    %41 = tpu.matmul %40, %23, %cst_38 {dimension_numbers = #tpu.dot_dimension_numbers<[1], [0], [0], [1], [0, 0, 1, 1], [], []>} : vector<8x32xf32>, vector<32x32xf32>, vector<8x32xf32> -> vector<8x32xf32>
    %42 = arith.addf %41, %31 : vector<8x32xf32>
    %cst_39 = arith.constant dense<0.000000e+00> : vector<8x32xf32>
    %43 = tpu.matmul %40, %25, %cst_39 {dimension_numbers = #tpu.dot_dimension_numbers<[1], [0], [0], [1], [0, 0, 1, 1], [], []>} : vector<8x32xf32>, vector<32x32xf32>, vector<8x32xf32> -> vector<8x32xf32>
    %44 = arith.addf %43, %35 : vector<8x32xf32>
    %cst_40 = arith.constant dense<0.000000e+00> : vector<8x32xf32>
    %45 = tpu.matmul %40, %27, %cst_40 {dimension_numbers = #tpu.dot_dimension_numbers<[1], [0], [0], [1], [0, 0, 1, 1], [], []>} : vector<8x32xf32>, vector<32x32xf32>, vector<8x32xf32> -> vector<8x32xf32>
    %46 = arith.addf %45, %39 : vector<8x32xf32>
    %47 = vector.extract_strided_slice %7 {offsets = [0, 0], sizes = [8, 32], strides = [1, 1]} : vector<64x32xf32> to vector<8x32xf32>
    %48 = arith.addf %47, %42 : vector<8x32xf32>
    %49 = arith.negf %48 : vector<8x32xf32>
    %50 = math.exp %49 : vector<8x32xf32>
    %cst_41 = arith.constant 1.000000e+00 : f32
    %51 = vector.broadcast %cst_41 : f32 to vector<8x32xf32>
    %52 = arith.addf %51, %50 : vector<8x32xf32>
    %53 = arith.divf %51, %52 : vector<8x32xf32>
    %54 = vector.extract_strided_slice %14 {offsets = [0, 0], sizes = [8, 32], strides = [1, 1]} : vector<64x32xf32> to vector<8x32xf32>
    %55 = arith.addf %54, %44 : vector<8x32xf32>
    %56 = arith.negf %55 : vector<8x32xf32>
    %57 = math.exp %56 : vector<8x32xf32>
    %cst_42 = arith.constant 1.000000e+00 : f32
    %58 = vector.broadcast %cst_42 : f32 to vector<8x32xf32>
    %59 = arith.addf %58, %57 : vector<8x32xf32>
    %60 = arith.divf %58, %59 : vector<8x32xf32>
    %61 = vector.extract_strided_slice %21 {offsets = [0, 0], sizes = [8, 32], strides = [1, 1]} : vector<64x32xf32> to vector<8x32xf32>
    %62 = arith.mulf %53, %46 : vector<8x32xf32>
    %63 = arith.addf %61, %62 : vector<8x32xf32>
    %64 = math.tanh %63 : vector<8x32xf32>
    %cst_43 = arith.constant 1.000000e+00 : f32
    %65 = vector.broadcast %cst_43 : f32 to vector<8x32xf32>
    %66 = arith.subf %65, %60 : vector<8x32xf32>
    %67 = arith.mulf %66, %64 : vector<8x32xf32>
    %68 = arith.mulf %60, %40 : vector<8x32xf32>
    %69 = arith.addf %67, %68 : vector<8x32xf32>
    %c0_44 = arith.constant 0 : index
    %c0_45 = arith.constant 0 : index
    %70 = vector.load %arg6[%c0_44, %c0_45] : memref<64x32xf32, #tpu.memory_space<vmem>>, vector<8x32xf32>
    tpu.vector_store %arg6[%c0_44, %c0_45], %69 {strides = array<i32>} : memref<64x32xf32, #tpu.memory_space<vmem>>, vector<8x32xf32>,
    %cst_46 = arith.constant dense<0.000000e+00> : vector<8x32xf32>
    %71 = tpu.matmul %69, %23, %cst_46 {dimension_numbers = #tpu.dot_dimension_numbers<[1], [0], [0], [1], [0, 0, 1, 1], [], []>} : vector<8x32xf32>, vector<32x32xf32>, vector<8x32xf32> -> vector<8x32xf32>
    %72 = arith.addf %71, %31 : vector<8x32xf32>
    %cst_47 = arith.constant dense<0.000000e+00> : vector<8x32xf32>
    %73 = tpu.matmul %69, %25, %cst_47 {dimension_numbers = #tpu.dot_dimension_numbers<[1], [0], [0], [1], [0, 0, 1, 1], [], []>} : vector<8x32xf32>, vector<32x32xf32>, vector<8x32xf32> -> vector<8x32xf32>
    %74 = arith.addf %73, %35 : vector<8x32xf32>
    %cst_48 = arith.constant dense<0.000000e+00> : vector<8x32xf32>
    %75 = tpu.matmul %69, %27, %cst_48 {dimension_numbers = #tpu.dot_dimension_numbers<[1], [0], [0], [1], [0, 0, 1, 1], [], []>} : vector<8x32xf32>, vector<32x32xf32>, vector<8x32xf32> -> vector<8x32xf32>
    %76 = arith.addf %75, %39 : vector<8x32xf32>
    %77 = vector.extract_strided_slice %7 {offsets = [8, 0], sizes = [8, 32], strides = [1, 1]} : vector<64x32xf32> to vector<8x32xf32>
    %78 = arith.addf %77, %72 : vector<8x32xf32>
    %79 = arith.negf %78 : vector<8x32xf32>
    %80 = math.exp %79 : vector<8x32xf32>
    %cst_49 = arith.constant 1.000000e+00 : f32
    %81 = vector.broadcast %cst_49 : f32 to vector<8x32xf32>
    %82 = arith.addf %81, %80 : vector<8x32xf32>
    %83 = arith.divf %81, %82 : vector<8x32xf32>
    %84 = vector.extract_strided_slice %14 {offsets = [8, 0], sizes = [8, 32], strides = [1, 1]} : vector<64x32xf32> to vector<8x32xf32>
    %85 = arith.addf %84, %74 : vector<8x32xf32>
    %86 = arith.negf %85 : vector<8x32xf32>
    %87 = math.exp %86 : vector<8x32xf32>
    %cst_50 = arith.constant 1.000000e+00 : f32
    %88 = vector.broadcast %cst_50 : f32 to vector<8x32xf32>
    %89 = arith.addf %88, %87 : vector<8x32xf32>
    %90 = arith.divf %88, %89 : vector<8x32xf32>
    %91 = vector.extract_strided_slice %21 {offsets = [8, 0], sizes = [8, 32], strides = [1, 1]} : vector<64x32xf32> to vector<8x32xf32>
    %92 = arith.mulf %83, %76 : vector<8x32xf32>
    %93 = arith.addf %91, %92 : vector<8x32xf32>
    %94 = math.tanh %93 : vector<8x32xf32>
    %cst_51 = arith.constant 1.000000e+00 : f32
    %95 = vector.broadcast %cst_51 : f32 to vector<8x32xf32>
    %96 = arith.subf %95, %90 : vector<8x32xf32>
    %97 = arith.mulf %96, %94 : vector<8x32xf32>
    %98 = arith.mulf %90, %69 : vector<8x32xf32>
    %99 = arith.addf %97, %98 : vector<8x32xf32>
    %c8 = arith.constant 8 : index
    %c0_52 = arith.constant 0 : index
    %100 = vector.load %arg6[%c8, %c0_52] : memref<64x32xf32, #tpu.memory_space<vmem>>, vector<8x32xf32>
    tpu.vector_store %arg6[%c8, %c0_52], %99 {strides = array<i32>} : memref<64x32xf32, #tpu.memory_space<vmem>>, vector<8x32xf32>,
    %cst_53 = arith.constant dense<0.000000e+00> : vector<8x32xf32>
    %101 = tpu.matmul %99, %23, %cst_53 {dimension_numbers = #tpu.dot_dimension_numbers<[1], [0], [0], [1], [0, 0, 1, 1], [], []>} : vector<8x32xf32>, vector<32x32xf32>, vector<8x32xf32> -> vector<8x32xf32>
    %102 = arith.addf %101, %31 : vector<8x32xf32>
    %cst_54 = arith.constant dense<0.000000e+00> : vector<8x32xf32>
    %103 = tpu.matmul %99, %25, %cst_54 {dimension_numbers = #tpu.dot_dimension_numbers<[1], [0], [0], [1], [0, 0, 1, 1], [], []>} : vector<8x32xf32>, vector<32x32xf32>, vector<8x32xf32> -> vector<8x32xf32>
    %104 = arith.addf %103, %35 : vector<8x32xf32>
    %cst_55 = arith.constant dense<0.000000e+00> : vector<8x32xf32>
    %105 = tpu.matmul %99, %27, %cst_55 {dimension_numbers = #tpu.dot_dimension_numbers<[1], [0], [0], [1], [0, 0, 1, 1], [], []>} : vector<8x32xf32>, vector<32x32xf32>, vector<8x32xf32> -> vector<8x32xf32>
    %106 = arith.addf %105, %39 : vector<8x32xf32>
    %107 = vector.extract_strided_slice %7 {offsets = [16, 0], sizes = [8, 32], strides = [1, 1]} : vector<64x32xf32> to vector<8x32xf32>
    %108 = arith.addf %107, %102 : vector<8x32xf32>
    %109 = arith.negf %108 : vector<8x32xf32>
    %110 = math.exp %109 : vector<8x32xf32>
    %cst_56 = arith.constant 1.000000e+00 : f32
    %111 = vector.broadcast %cst_56 : f32 to vector<8x32xf32>
    %112 = arith.addf %111, %110 : vector<8x32xf32>
    %113 = arith.divf %111, %112 : vector<8x32xf32>
    %114 = vector.extract_strided_slice %14 {offsets = [16, 0], sizes = [8, 32], strides = [1, 1]} : vector<64x32xf32> to vector<8x32xf32>
    %115 = arith.addf %114, %104 : vector<8x32xf32>
    %116 = arith.negf %115 : vector<8x32xf32>
    %117 = math.exp %116 : vector<8x32xf32>
    %cst_57 = arith.constant 1.000000e+00 : f32
    %118 = vector.broadcast %cst_57 : f32 to vector<8x32xf32>
    %119 = arith.addf %118, %117 : vector<8x32xf32>
    %120 = arith.divf %118, %119 : vector<8x32xf32>
    %121 = vector.extract_strided_slice %21 {offsets = [16, 0], sizes = [8, 32], strides = [1, 1]} : vector<64x32xf32> to vector<8x32xf32>
    %122 = arith.mulf %113, %106 : vector<8x32xf32>
    %123 = arith.addf %121, %122 : vector<8x32xf32>
    %124 = math.tanh %123 : vector<8x32xf32>
    %cst_58 = arith.constant 1.000000e+00 : f32
    %125 = vector.broadcast %cst_58 : f32 to vector<8x32xf32>
    %126 = arith.subf %125, %120 : vector<8x32xf32>
    %127 = arith.mulf %126, %124 : vector<8x32xf32>
    %128 = arith.mulf %120, %99 : vector<8x32xf32>
    %129 = arith.addf %127, %128 : vector<8x32xf32>
    %c16 = arith.constant 16 : index
    %c0_59 = arith.constant 0 : index
    %130 = vector.load %arg6[%c16, %c0_59] : memref<64x32xf32, #tpu.memory_space<vmem>>, vector<8x32xf32>
    tpu.vector_store %arg6[%c16, %c0_59], %129 {strides = array<i32>} : memref<64x32xf32, #tpu.memory_space<vmem>>, vector<8x32xf32>,
    %cst_60 = arith.constant dense<0.000000e+00> : vector<8x32xf32>
    %131 = tpu.matmul %129, %23, %cst_60 {dimension_numbers = #tpu.dot_dimension_numbers<[1], [0], [0], [1], [0, 0, 1, 1], [], []>} : vector<8x32xf32>, vector<32x32xf32>, vector<8x32xf32> -> vector<8x32xf32>
    %132 = arith.addf %131, %31 : vector<8x32xf32>
    %cst_61 = arith.constant dense<0.000000e+00> : vector<8x32xf32>
    %133 = tpu.matmul %129, %25, %cst_61 {dimension_numbers = #tpu.dot_dimension_numbers<[1], [0], [0], [1], [0, 0, 1, 1], [], []>} : vector<8x32xf32>, vector<32x32xf32>, vector<8x32xf32> -> vector<8x32xf32>
    %134 = arith.addf %133, %35 : vector<8x32xf32>
    %cst_62 = arith.constant dense<0.000000e+00> : vector<8x32xf32>
    %135 = tpu.matmul %129, %27, %cst_62 {dimension_numbers = #tpu.dot_dimension_numbers<[1], [0], [0], [1], [0, 0, 1, 1], [], []>} : vector<8x32xf32>, vector<32x32xf32>, vector<8x32xf32> -> vector<8x32xf32>
    %136 = arith.addf %135, %39 : vector<8x32xf32>
    %137 = vector.extract_strided_slice %7 {offsets = [24, 0], sizes = [8, 32], strides = [1, 1]} : vector<64x32xf32> to vector<8x32xf32>
    %138 = arith.addf %137, %132 : vector<8x32xf32>
    %139 = arith.negf %138 : vector<8x32xf32>
    %140 = math.exp %139 : vector<8x32xf32>
    %cst_63 = arith.constant 1.000000e+00 : f32
    %141 = vector.broadcast %cst_63 : f32 to vector<8x32xf32>
    %142 = arith.addf %141, %140 : vector<8x32xf32>
    %143 = arith.divf %141, %142 : vector<8x32xf32>
    %144 = vector.extract_strided_slice %14 {offsets = [24, 0], sizes = [8, 32], strides = [1, 1]} : vector<64x32xf32> to vector<8x32xf32>
    %145 = arith.addf %144, %134 : vector<8x32xf32>
    %146 = arith.negf %145 : vector<8x32xf32>
    %147 = math.exp %146 : vector<8x32xf32>
    %cst_64 = arith.constant 1.000000e+00 : f32
    %148 = vector.broadcast %cst_64 : f32 to vector<8x32xf32>
    %149 = arith.addf %148, %147 : vector<8x32xf32>
    %150 = arith.divf %148, %149 : vector<8x32xf32>
    %151 = vector.extract_strided_slice %21 {offsets = [24, 0], sizes = [8, 32], strides = [1, 1]} : vector<64x32xf32> to vector<8x32xf32>
    %152 = arith.mulf %143, %136 : vector<8x32xf32>
    %153 = arith.addf %151, %152 : vector<8x32xf32>
    %154 = math.tanh %153 : vector<8x32xf32>
    %cst_65 = arith.constant 1.000000e+00 : f32
    %155 = vector.broadcast %cst_65 : f32 to vector<8x32xf32>
    %156 = arith.subf %155, %150 : vector<8x32xf32>
    %157 = arith.mulf %156, %154 : vector<8x32xf32>
    %158 = arith.mulf %150, %129 : vector<8x32xf32>
    %159 = arith.addf %157, %158 : vector<8x32xf32>
    %c24 = arith.constant 24 : index
    %c0_66 = arith.constant 0 : index
    %160 = vector.load %arg6[%c24, %c0_66] : memref<64x32xf32, #tpu.memory_space<vmem>>, vector<8x32xf32>
    tpu.vector_store %arg6[%c24, %c0_66], %159 {strides = array<i32>} : memref<64x32xf32, #tpu.memory_space<vmem>>, vector<8x32xf32>,
    %cst_67 = arith.constant dense<0.000000e+00> : vector<8x32xf32>
    %161 = tpu.matmul %159, %23, %cst_67 {dimension_numbers = #tpu.dot_dimension_numbers<[1], [0], [0], [1], [0, 0, 1, 1], [], []>} : vector<8x32xf32>, vector<32x32xf32>, vector<8x32xf32> -> vector<8x32xf32>
    %162 = arith.addf %161, %31 : vector<8x32xf32>
    %cst_68 = arith.constant dense<0.000000e+00> : vector<8x32xf32>
    %163 = tpu.matmul %159, %25, %cst_68 {dimension_numbers = #tpu.dot_dimension_numbers<[1], [0], [0], [1], [0, 0, 1, 1], [], []>} : vector<8x32xf32>, vector<32x32xf32>, vector<8x32xf32> -> vector<8x32xf32>
    %164 = arith.addf %163, %35 : vector<8x32xf32>
    %cst_69 = arith.constant dense<0.000000e+00> : vector<8x32xf32>
    %165 = tpu.matmul %159, %27, %cst_69 {dimension_numbers = #tpu.dot_dimension_numbers<[1], [0], [0], [1], [0, 0, 1, 1], [], []>} : vector<8x32xf32>, vector<32x32xf32>, vector<8x32xf32> -> vector<8x32xf32>
    %166 = arith.addf %165, %39 : vector<8x32xf32>
    %167 = vector.extract_strided_slice %7 {offsets = [32, 0], sizes = [8, 32], strides = [1, 1]} : vector<64x32xf32> to vector<8x32xf32>
    %168 = arith.addf %167, %162 : vector<8x32xf32>
    %169 = arith.negf %168 : vector<8x32xf32>
    %170 = math.exp %169 : vector<8x32xf32>
    %cst_70 = arith.constant 1.000000e+00 : f32
    %171 = vector.broadcast %cst_70 : f32 to vector<8x32xf32>
    %172 = arith.addf %171, %170 : vector<8x32xf32>
    %173 = arith.divf %171, %172 : vector<8x32xf32>
    %174 = vector.extract_strided_slice %14 {offsets = [32, 0], sizes = [8, 32], strides = [1, 1]} : vector<64x32xf32> to vector<8x32xf32>
    %175 = arith.addf %174, %164 : vector<8x32xf32>
    %176 = arith.negf %175 : vector<8x32xf32>
    %177 = math.exp %176 : vector<8x32xf32>
    %cst_71 = arith.constant 1.000000e+00 : f32
    %178 = vector.broadcast %cst_71 : f32 to vector<8x32xf32>
    %179 = arith.addf %178, %177 : vector<8x32xf32>
    %180 = arith.divf %178, %179 : vector<8x32xf32>
    %181 = vector.extract_strided_slice %21 {offsets = [32, 0], sizes = [8, 32], strides = [1, 1]} : vector<64x32xf32> to vector<8x32xf32>
    %182 = arith.mulf %173, %166 : vector<8x32xf32>
    %183 = arith.addf %181, %182 : vector<8x32xf32>
    %184 = math.tanh %183 : vector<8x32xf32>
    %cst_72 = arith.constant 1.000000e+00 : f32
    %185 = vector.broadcast %cst_72 : f32 to vector<8x32xf32>
    %186 = arith.subf %185, %180 : vector<8x32xf32>
    %187 = arith.mulf %186, %184 : vector<8x32xf32>
    %188 = arith.mulf %180, %159 : vector<8x32xf32>
    %189 = arith.addf %187, %188 : vector<8x32xf32>
    %c32 = arith.constant 32 : index
    %c0_73 = arith.constant 0 : index
    %190 = vector.load %arg6[%c32, %c0_73] : memref<64x32xf32, #tpu.memory_space<vmem>>, vector<8x32xf32>
    tpu.vector_store %arg6[%c32, %c0_73], %189 {strides = array<i32>} : memref<64x32xf32, #tpu.memory_space<vmem>>, vector<8x32xf32>,
    %cst_74 = arith.constant dense<0.000000e+00> : vector<8x32xf32>
    %191 = tpu.matmul %189, %23, %cst_74 {dimension_numbers = #tpu.dot_dimension_numbers<[1], [0], [0], [1], [0, 0, 1, 1], [], []>} : vector<8x32xf32>, vector<32x32xf32>, vector<8x32xf32> -> vector<8x32xf32>
    %192 = arith.addf %191, %31 : vector<8x32xf32>
    %cst_75 = arith.constant dense<0.000000e+00> : vector<8x32xf32>
    %193 = tpu.matmul %189, %25, %cst_75 {dimension_numbers = #tpu.dot_dimension_numbers<[1], [0], [0], [1], [0, 0, 1, 1], [], []>} : vector<8x32xf32>, vector<32x32xf32>, vector<8x32xf32> -> vector<8x32xf32>
    %194 = arith.addf %193, %35 : vector<8x32xf32>
    %cst_76 = arith.constant dense<0.000000e+00> : vector<8x32xf32>
    %195 = tpu.matmul %189, %27, %cst_76 {dimension_numbers = #tpu.dot_dimension_numbers<[1], [0], [0], [1], [0, 0, 1, 1], [], []>} : vector<8x32xf32>, vector<32x32xf32>, vector<8x32xf32> -> vector<8x32xf32>
    %196 = arith.addf %195, %39 : vector<8x32xf32>
    %197 = vector.extract_strided_slice %7 {offsets = [40, 0], sizes = [8, 32], strides = [1, 1]} : vector<64x32xf32> to vector<8x32xf32>
    %198 = arith.addf %197, %192 : vector<8x32xf32>
    %199 = arith.negf %198 : vector<8x32xf32>
    %200 = math.exp %199 : vector<8x32xf32>
    %cst_77 = arith.constant 1.000000e+00 : f32
    %201 = vector.broadcast %cst_77 : f32 to vector<8x32xf32>
    %202 = arith.addf %201, %200 : vector<8x32xf32>
    %203 = arith.divf %201, %202 : vector<8x32xf32>
    %204 = vector.extract_strided_slice %14 {offsets = [40, 0], sizes = [8, 32], strides = [1, 1]} : vector<64x32xf32> to vector<8x32xf32>
    %205 = arith.addf %204, %194 : vector<8x32xf32>
    %206 = arith.negf %205 : vector<8x32xf32>
    %207 = math.exp %206 : vector<8x32xf32>
    %cst_78 = arith.constant 1.000000e+00 : f32
    %208 = vector.broadcast %cst_78 : f32 to vector<8x32xf32>
    %209 = arith.addf %208, %207 : vector<8x32xf32>
    %210 = arith.divf %208, %209 : vector<8x32xf32>
    %211 = vector.extract_strided_slice %21 {offsets = [40, 0], sizes = [8, 32], strides = [1, 1]} : vector<64x32xf32> to vector<8x32xf32>
    %212 = arith.mulf %203, %196 : vector<8x32xf32>
    %213 = arith.addf %211, %212 : vector<8x32xf32>
    %214 = math.tanh %213 : vector<8x32xf32>
    %cst_79 = arith.constant 1.000000e+00 : f32
    %215 = vector.broadcast %cst_79 : f32 to vector<8x32xf32>
    %216 = arith.subf %215, %210 : vector<8x32xf32>
    %217 = arith.mulf %216, %214 : vector<8x32xf32>
    %218 = arith.mulf %210, %189 : vector<8x32xf32>
    %219 = arith.addf %217, %218 : vector<8x32xf32>
    %c40 = arith.constant 40 : index
    %c0_80 = arith.constant 0 : index
    %220 = vector.load %arg6[%c40, %c0_80] : memref<64x32xf32, #tpu.memory_space<vmem>>, vector<8x32xf32>
    tpu.vector_store %arg6[%c40, %c0_80], %219 {strides = array<i32>} : memref<64x32xf32, #tpu.memory_space<vmem>>, vector<8x32xf32>,
    %cst_81 = arith.constant dense<0.000000e+00> : vector<8x32xf32>
    %221 = tpu.matmul %219, %23, %cst_81 {dimension_numbers = #tpu.dot_dimension_numbers<[1], [0], [0], [1], [0, 0, 1, 1], [], []>} : vector<8x32xf32>, vector<32x32xf32>, vector<8x32xf32> -> vector<8x32xf32>
    %222 = arith.addf %221, %31 : vector<8x32xf32>
    %cst_82 = arith.constant dense<0.000000e+00> : vector<8x32xf32>
    %223 = tpu.matmul %219, %25, %cst_82 {dimension_numbers = #tpu.dot_dimension_numbers<[1], [0], [0], [1], [0, 0, 1, 1], [], []>} : vector<8x32xf32>, vector<32x32xf32>, vector<8x32xf32> -> vector<8x32xf32>
    %224 = arith.addf %223, %35 : vector<8x32xf32>
    %cst_83 = arith.constant dense<0.000000e+00> : vector<8x32xf32>
    %225 = tpu.matmul %219, %27, %cst_83 {dimension_numbers = #tpu.dot_dimension_numbers<[1], [0], [0], [1], [0, 0, 1, 1], [], []>} : vector<8x32xf32>, vector<32x32xf32>, vector<8x32xf32> -> vector<8x32xf32>
    %226 = arith.addf %225, %39 : vector<8x32xf32>
    %227 = vector.extract_strided_slice %7 {offsets = [48, 0], sizes = [8, 32], strides = [1, 1]} : vector<64x32xf32> to vector<8x32xf32>
    %228 = arith.addf %227, %222 : vector<8x32xf32>
    %229 = arith.negf %228 : vector<8x32xf32>
    %230 = math.exp %229 : vector<8x32xf32>
    %cst_84 = arith.constant 1.000000e+00 : f32
    %231 = vector.broadcast %cst_84 : f32 to vector<8x32xf32>
    %232 = arith.addf %231, %230 : vector<8x32xf32>
    %233 = arith.divf %231, %232 : vector<8x32xf32>
    %234 = vector.extract_strided_slice %14 {offsets = [48, 0], sizes = [8, 32], strides = [1, 1]} : vector<64x32xf32> to vector<8x32xf32>
    %235 = arith.addf %234, %224 : vector<8x32xf32>
    %236 = arith.negf %235 : vector<8x32xf32>
    %237 = math.exp %236 : vector<8x32xf32>
    %cst_85 = arith.constant 1.000000e+00 : f32
    %238 = vector.broadcast %cst_85 : f32 to vector<8x32xf32>
    %239 = arith.addf %238, %237 : vector<8x32xf32>
    %240 = arith.divf %238, %239 : vector<8x32xf32>
    %241 = vector.extract_strided_slice %21 {offsets = [48, 0], sizes = [8, 32], strides = [1, 1]} : vector<64x32xf32> to vector<8x32xf32>
    %242 = arith.mulf %233, %226 : vector<8x32xf32>
    %243 = arith.addf %241, %242 : vector<8x32xf32>
    %244 = math.tanh %243 : vector<8x32xf32>
    %cst_86 = arith.constant 1.000000e+00 : f32
    %245 = vector.broadcast %cst_86 : f32 to vector<8x32xf32>
    %246 = arith.subf %245, %240 : vector<8x32xf32>
    %247 = arith.mulf %246, %244 : vector<8x32xf32>
    %248 = arith.mulf %240, %219 : vector<8x32xf32>
    %249 = arith.addf %247, %248 : vector<8x32xf32>
    %c48 = arith.constant 48 : index
    %c0_87 = arith.constant 0 : index
    %250 = vector.load %arg6[%c48, %c0_87] : memref<64x32xf32, #tpu.memory_space<vmem>>, vector<8x32xf32>
    tpu.vector_store %arg6[%c48, %c0_87], %249 {strides = array<i32>} : memref<64x32xf32, #tpu.memory_space<vmem>>, vector<8x32xf32>,
    %cst_88 = arith.constant dense<0.000000e+00> : vector<8x32xf32>
    %251 = tpu.matmul %249, %23, %cst_88 {dimension_numbers = #tpu.dot_dimension_numbers<[1], [0], [0], [1], [0, 0, 1, 1], [], []>} : vector<8x32xf32>, vector<32x32xf32>, vector<8x32xf32> -> vector<8x32xf32>
    %252 = arith.addf %251, %31 : vector<8x32xf32>
    %cst_89 = arith.constant dense<0.000000e+00> : vector<8x32xf32>
    %253 = tpu.matmul %249, %25, %cst_89 {dimension_numbers = #tpu.dot_dimension_numbers<[1], [0], [0], [1], [0, 0, 1, 1], [], []>} : vector<8x32xf32>, vector<32x32xf32>, vector<8x32xf32> -> vector<8x32xf32>
    %254 = arith.addf %253, %35 : vector<8x32xf32>
    %cst_90 = arith.constant dense<0.000000e+00> : vector<8x32xf32>
    %255 = tpu.matmul %249, %27, %cst_90 {dimension_numbers = #tpu.dot_dimension_numbers<[1], [0], [0], [1], [0, 0, 1, 1], [], []>} : vector<8x32xf32>, vector<32x32xf32>, vector<8x32xf32> -> vector<8x32xf32>
    %256 = arith.addf %255, %39 : vector<8x32xf32>
    %257 = vector.extract_strided_slice %7 {offsets = [56, 0], sizes = [8, 32], strides = [1, 1]} : vector<64x32xf32> to vector<8x32xf32>
    %258 = arith.addf %257, %252 : vector<8x32xf32>
    %259 = arith.negf %258 : vector<8x32xf32>
    %260 = math.exp %259 : vector<8x32xf32>
    %cst_91 = arith.constant 1.000000e+00 : f32
    %261 = vector.broadcast %cst_91 : f32 to vector<8x32xf32>
    %262 = arith.addf %261, %260 : vector<8x32xf32>
    %263 = arith.divf %261, %262 : vector<8x32xf32>
    %264 = vector.extract_strided_slice %14 {offsets = [56, 0], sizes = [8, 32], strides = [1, 1]} : vector<64x32xf32> to vector<8x32xf32>
    %265 = arith.addf %264, %254 : vector<8x32xf32>
    %266 = arith.negf %265 : vector<8x32xf32>
    %267 = math.exp %266 : vector<8x32xf32>
    %cst_92 = arith.constant 1.000000e+00 : f32
    %268 = vector.broadcast %cst_92 : f32 to vector<8x32xf32>
    %269 = arith.addf %268, %267 : vector<8x32xf32>
    %270 = arith.divf %268, %269 : vector<8x32xf32>
    %271 = vector.extract_strided_slice %21 {offsets = [56, 0], sizes = [8, 32], strides = [1, 1]} : vector<64x32xf32> to vector<8x32xf32>
    %272 = arith.mulf %263, %256 : vector<8x32xf32>
    %273 = arith.addf %271, %272 : vector<8x32xf32>
    %274 = math.tanh %273 : vector<8x32xf32>
    %cst_93 = arith.constant 1.000000e+00 : f32
    %275 = vector.broadcast %cst_93 : f32 to vector<8x32xf32>
    %276 = arith.subf %275, %270 : vector<8x32xf32>
    %277 = arith.mulf %276, %274 : vector<8x32xf32>
    %278 = arith.mulf %270, %249 : vector<8x32xf32>
    %279 = arith.addf %277, %278 : vector<8x32xf32>
    %c56 = arith.constant 56 : index
    %c0_94 = arith.constant 0 : index
    %280 = vector.load %arg6[%c56, %c0_94] : memref<64x32xf32, #tpu.memory_space<vmem>>, vector<8x32xf32>
    tpu.vector_store %arg6[%c56, %c0_94], %279 {strides = array<i32>} : memref<64x32xf32, #tpu.memory_space<vmem>>, vector<8x32xf32>,
    return
  }
  func.func @transform_0(%arg0: i32) -> (i32, i32) {
    %c0_i32 = arith.constant 0 : i32
    %c0_i32_0 = arith.constant 0 : i32
    %c0_i32_1 = arith.constant 0 : i32
    return %c0_i32, %c0_i32_0 : i32, i32
  }
  func.func @transform_1(%arg0: i32) -> (i32, i32, i32) {
    %c0_i32 = arith.constant 0 : i32
    %c0_i32_0 = arith.constant 0 : i32
    %c0_i32_1 = arith.constant 0 : i32
    %c0_i32_2 = arith.constant 0 : i32
    return %c0_i32, %c0_i32_0, %c0_i32_1 : i32, i32, i32
  }
  func.func @transform_2(%arg0: i32) -> (i32, i32, i32) {
    %c0_i32 = arith.constant 0 : i32
    %c0_i32_0 = arith.constant 0 : i32
    %c0_i32_1 = arith.constant 0 : i32
    %c0_i32_2 = arith.constant 0 : i32
    return %c0_i32, %c0_i32_0, %c0_i32_1 : i32, i32, i32
  }
  func.func @transform_3(%arg0: i32) -> (i32, i32, i32) {
    %c0_i32 = arith.constant 0 : i32
    %c0_i32_0 = arith.constant 0 : i32
    %c0_i32_1 = arith.constant 0 : i32
    %c0_i32_2 = arith.constant 0 : i32
    return %c0_i32, %c0_i32_0, %c0_i32_1 : i32, i32, i32
  }
  func.func @transform_4(%arg0: i32) -> (i32, i32, i32) {
    %c0_i32 = arith.constant 0 : i32
    %c0_i32_0 = arith.constant 0 : i32
    %c0_i32_1 = arith.constant 0 : i32
    %c0_i32_2 = arith.constant 0 : i32
    return %c0_i32, %c0_i32_0, %c0_i32_1 : i32, i32, i32
  }
  func.func @transform_5(%arg0: i32) -> (i32, i32) {
    %c0_i32 = arith.constant 0 : i32
    %c0_i32_0 = arith.constant 0 : i32
    %c0_i32_1 = arith.constant 0 : i32
    return %c0_i32, %c0_i32_0 : i32, i32
  }
}

</mosaic_0001>

<bundles_post_ra>
// kernel: tpu_custom_call.1
= control target key start
LH: loop header
LB: loop body
LE: loop exit
PB: predicated region body
PF: predicated region fallthrough
CT: control target
= control target key end

     0   :  { %10 = vsyncpa [#allocation3], 0  ;;  %s3178_s18 = smov [#allocation2]   ;;  %s3638_s0 = inlined_call_operand.vmem [shape: f32[64,32], index: 0, kind: input, shape index: {}]   ;;  %s3639_s1 = inlined_call_operand.vmem [shape: f32[3,32,32], index: 1, kind: input, shape index: {}]   ;;  %s3640_s2 = inlined_call_operand.hbm [shape: f32[3,32,32], index: 2, kind: input, shape index: {}]   ;;  %s3641_s3 = inlined_call_operand.vmem [shape: f32[3,1,32], index: 3, kind: input, shape index: {}]   ;;  %s3642_s4 = inlined_call_operand.vmem [shape: f32[3,1,32], index: 4, kind: input, shape index: {}]   ;;  %s3643_s5 = inlined_call_operand.vmem [shape: f32[64,32], index: 5, kind: output, shape index: {}]  }
   0x1   :  { %s20_s19 = sshll.u32 %s3178_s18, 4  ;;  %s3154_s22 = scalar_lea.hbm %s3640_s2, 1536  ;;  %s21_s19 = int_to_ptr.vmem [resolvable:$true] %s20_s19 }
   0x2   :  { %p3155_p0 = scmp.ne.s32.totalorder %s3640_s2, %s3154_s22  ;;  %p3158_p1 = scmp.lt.u32.totalorder %s3154_s22, %s3640_s2 }
   0x4   :  { %p3160_p2 = pnand %p3158_p1, %p3155_p0 }
   0x6   :  { %3163 = shalt.err (!%p3160_p2)
}
   0x7   :  { %s3164_s27 = scalar_lea.vmem %s21_s19, 1536  ;;  %p3169_p4 = scmp.lt.s32.totalorder %s21_s19, %s21_s19 }
   0x8   :  { %p3165_p3 = scmp.ne.s32.totalorder %s21_s19, %s3164_s27  ;;  %p3170_p5 = scmp.lt.s32.totalorder %s3164_s27, %s3164_s27 }
   0xa   :  { %p3171_p6 = por %p3170_p5, %p3169_p4 }
   0xc   :  { %p3172_p7 = pnand %p3171_p6, %p3165_p3 }
   0xe   :  { %3175 = shalt.err (!%p3172_p7)
}
   0xf   :  { %s3179_s28 = smov 128   ;;  %s3180_s29 = smov 8  }
  0x10   :  { %26 = dma.hbm_to_vmem [thread:$0]  %s3640_s2, 1536, %s21_s19, [#allocation3], %s3179_s28, %s3179_s28, %s3180_s29  }
  0x11   :  { %3176 = dma.done.wait [#allocation3], 1536  }
  0x12   :  { %3177 = vsyncadd [#allocation3], 4294965760  ;;  %vm53_vm0 = vcmask 261120   ;;  %v2350_v0 = vld [vmem:[%s3639_s1 + $0x20] sm:$0xff]  ;;  %v2351_v1 = vld [vmem:[%s3639_s1 + $0x28] sm:$0xff]  ;;  %v3181_v19 = vmov 0.0|0.0  }
  0x13   :  { %v2352_v2 = vld [vmem:[%s3639_s1 + $0x30] sm:$0xff]  ;;  %v2908_v3 = vpack.c.bf16 %v2351_v1, %v2350_v0  ;;  %v2353_v4 = vld [vmem:[%s3639_s1 + $0x38] sm:$0xff]  ;;  %v3241_v5 = vld [vmem:[%s3638_s0] sm:$0xff]  ;;  %vm3182_vm1 = vmmov 0   ;;  %v3183_v35 = vmov 0.0  }
  0x14   :  { %v2912_v6 = vpack.c.bf16 %v2353_v4, %v2352_v2  ;;  %2604 = vmatprep.mubr.msk.f32.mxu1 %vm53_vm0, %v3241_v5  ;;  %2584 = vmatprep.mubr.msk.f32.mxu0 %vm53_vm0, %v3241_v5  ;;  %v42_v7 = vld [vmem:[%s3639_s1] sm:$0xff]  ;;  %v43_v8 = vld [vmem:[%s3639_s1 + $0x8] sm:$0xff]  ;;  %v44_v10 = vld [vmem:[%s3639_s1 + $0x10] sm:$0xff] }
  0x15   :  { %2909 = vmatprep.subr.bf16.mxu1 %v2908_v3  ;;  %v2900_v9 = vpack.c.bf16 %v43_v8, %v42_v7  ;;  %v45_v11 = vld [vmem:[%s3639_s1 + $0x18] sm:$0xff]  ;;  %v419_v12 = vld [vmem:[#allocation2] sm:$0xff]  ;;  %v420_v13 = vld [vmem:[#allocation2 + $0x8] sm:$0xff] }
  0x16   :  { %2911 = vmatpush3.bf16.msra.mxu1 %v2908_v3  ;;  %v2904_v14 = vpack.c.bf16 %v45_v11, %v44_v10  ;;  %v2364_v15 = vld [vmem:[%s3639_s1 + $0x40] sm:$0xff]  ;;  %v2365_v16 = vld [vmem:[%s3639_s1 + $0x48] sm:$0xff]  ;;  %v3268_v18 = vpack.c.bf16 %v420_v13, %v419_v12  ;;  %v36_v20 = vld [vmem:[%s3638_s0 + $0x10] sm:$0xff] }
  0x17   :  { %2913 = vmatprep.subr.bf16.mxu1 %v2912_v6  ;;  %2901 = vmatprep.subr.bf16.mxu0 %v2900_v9  ;;  %v35_v17 = vld [vmem:[%s3638_s0 + $0x8] sm:$0xff]  ;;  %v421_v21 = vld [vmem:[#allocation2 + $0x10] sm:$0xff]  ;;  %v422_v22 = vld [vmem:[#allocation2 + $0x18] sm:$0xff]  ;;  %v2916_v23 = vpack.c.bf16 %v2365_v16, %v2364_v15 }
  0x18   :  { %2903 = vmatpush3.bf16.msra.mxu0 %v2900_v9  ;;  %v2366_v24 = vld [vmem:[%s3639_s1 + $0x50] sm:$0xff]  ;;  %v2367_v25 = vld [vmem:[%s3639_s1 + $0x58] sm:$0xff]  ;;  %v3286_v27 = vpack.c.bf16 %v422_v22, %v421_v21  ;;  %v38_v28 = vld [vmem:[%s3638_s0 + $0x20] sm:$0xff] }
  0x19   :  { %2905 = vmatprep.subr.bf16.mxu0 %v2904_v14  ;;  %v37_v26 = vld [vmem:[%s3638_s0 + $0x18] sm:$0xff]  ;;  %v2920_v29 = vpack.c.bf16 %v2367_v25, %v2366_v24  ;;  %v39_v30 = vld [vmem:[%s3638_s0 + $0x28] sm:$0xff]  ;;  %v40_v31 = vld [vmem:[%s3638_s0 + $0x30] sm:$0xff] }
  0x1a   :  { %2915 = vmatpush3.bf16.msra.mxu1 %v2912_v6  ;;  %v41_v32 = vld [vmem:[%s3638_s0 + $0x38] sm:$0xff]  ;;  %v424_v33 = vld [vmem:[#allocation2 + $0x20] sm:$0xff]  ;;  %v425_v34 = vld [vmem:[#allocation2 + $0x28] sm:$0xff] }
  0x1b   :  { %2924 = vmatprep.subr.bf16.mxu1 %v3181_v19  ;;  %v3317_v36 = vpack.c.bf16 %v425_v34, %v424_v33  ;;  %v429_v37 = vld [vmem:[#allocation2 + $0x40] sm:$0xff]  ;;  %v430_v38 = vld [vmem:[#allocation2 + $0x48] sm:$0xff]  ;;  %v426_v39 = vld [vmem:[#allocation2 + $0x30] sm:$0xff] }
  0x1c   :  { %2907 = vmatpush3.bf16.msra.mxu0 %v2904_v14  ;;  %v427_v40 = vld [vmem:[#allocation2 + $0x38] sm:$0xff]  ;;  %v3323_v41 = vpack.c.bf16 %v430_v38, %v429_v37  ;;  %v431_v43 = vld [vmem:[#allocation2 + $0x50] sm:$0xff]  ;;  %v2355_v46 = vld [vmem:[%s3641_s3 + $0x1] ss:$0 sm:$0xff] }
  0x1d   :  { %2605 = vmatmul.mubr.msk.f32.vlgmr.msra.gmra.mrb[0].mxu1 %vm53_vm0, %v35_v17  ;;  %2917 = vmatprep.subr.bf16.mxu0 %v2916_v23  ;;  %v3326_v42 = vpack.c.bf16 %v427_v40, %v426_v39  ;;  %v432_v44 = vld [vmem:[#allocation2 + $0x58] sm:$0xff]  ;;  %v2341_v50 = vld [vmem:[%s3641_s3] ss:$0 sm:$0xff]  ;;  %v2369_v21 = vld [vmem:[%s3641_s3 + $0x2] ss:$0 sm:$0xff] }
  0x1e   :  { %2926 = vmatpush3.bf16.msra.mxu1 %v3268_v18  ;;  %2607 = vmatprep.mubr.msk.f32.mxu1 %vm53_vm0, %v36_v20  ;;  %v3336_v45 = vpack.c.bf16 %v432_v44, %v431_v43  ;;  %v3395_v10 = vld [vmem:[%s3642_s4] ss:$0 sm:$0xff] }
  0x1f   :  { %2927 = vmatprep.subr.bf16.mxu1 %v3181_v19  ;;  %2585 = vmatmul.mubr.msk.f32.vlgmr.msra.gmra.mrb[0].mxu0 %vm53_vm0, %v35_v17 }
  0x20   :  { %2919 = vmatpush3.bf16.msra.mxu0 %v2916_v23  ;;  %2587 = vmatprep.mubr.msk.f32.mxu0 %vm53_vm0, %v36_v20 }
  0x21   :  { %2608 = vmatmul.mubr.msk.f32.gmra.mrb[2].mxu1 %vm53_vm0, %v37_v26  ;;  %2921 = vmatprep.subr.bf16.mxu0 %v2920_v29 }
  0x22   :  { %2610 = vmatprep.mubr.msk.f32.mxu1 %vm53_vm0, %v38_v28  ;;  %2929 = vmatpush3.bf16.msra.mxu1 %v3286_v27 }
  0x23   :  { %2930 = vmatprep.subr.bf16.mxu1 %v3181_v19  ;;  %2588 = vmatmul.mubr.msk.f32.gmra.mrb[2].mxu0 %vm53_vm0, %v37_v26 }
  0x24   :  { %2590 = vmatprep.mubr.msk.f32.mxu0 %vm53_vm0, %v38_v28  ;;  %2923 = vmatpush3.bf16.msra.mxu0 %v2920_v29 }
  0x25   :  { %2611 = vmatmul.mubr.msk.f32.gmra.mrb[4].mxu1 %vm53_vm0, %v39_v30  ;;  %2936 = vmatprep.subr.bf16.mxu0 %v3181_v19 }
  0x26   :  { %2613 = vmatprep.mubr.msk.f32.mxu1 %vm53_vm0, %v40_v31 }
  0x27   :  { %2591 = vmatmul.mubr.msk.f32.gmra.mrb[4].mxu0 %vm53_vm0, %v39_v30 }
  0x28   :  { %2593 = vmatprep.mubr.msk.f32.mxu0 %vm53_vm0, %v40_v31 }
  0x29   :  { %2614 = vmatmul.mubr.msk.f32.gmra.mrb[6].mxu1 %vm53_vm0, %v41_v32 }
  0x2a   :  { %2644 = vmatprep.mubr.msk.f32.mxu1 %vm3182_vm1, %v3183_v35 }
  0x2b   :  { %2594 = vmatmul.mubr.msk.f32.gmra.mrb[6].mxu0 %vm53_vm0, %v41_v32 }
  0x2c   :  { %2624 = vmatprep.mubr.msk.f32.mxu0 %vm53_vm0, %v3241_v5 }
  0x2d   :  { %2645 = vmatmul.mubr.f32.vlgmr.msra.gmra.mrb[8].mxu1 %v3183_v35 }
  0x2e   :  { %2932 = vmatpush3.bf16.msra.mxu1 %v3317_v36  ;;  %2655 = vmatprep.mubr.msk.f32.mxu1 %vm3182_vm1, %v3183_v35 }
  0x2f   :  { %2933 = vmatprep.subr.bf16.mxu1 %v3181_v19  ;;  %2625 = vmatmul.mubr.msk.f32.vlgmr.msra.gmra.mrb[8].mxu0 %vm53_vm0, %v35_v17 }
  0x30   :  { %2938 = vmatpush3.bf16.msra.mxu0 %v3323_v41  ;;  %2627 = vmatprep.mubr.msk.f32.mxu0 %vm53_vm0, %v36_v20 }
  0x31   :  { %2939 = vmatprep.subr.bf16.mxu0 %v3181_v19 }
  0x32   :  { %2935 = vmatpush3.bf16.msra.mxu1 %v3326_v42 }
  0x33   :  { %2942 = vmatprep.subr.bf16.mxu1 %v3181_v19  ;;  %2628 = vmatmul.mubr.msk.f32.gmra.mrb[10].mxu0 %vm53_vm0, %v37_v26 }
  0x34   :  { %2630 = vmatprep.mubr.msk.f32.mxu0 %vm53_vm0, %v38_v28  ;;  %2941 = vmatpush3.bf16.msra.mxu0 %v3336_v45  ;;  %v3410_v28 = vld [vmem:[%s3642_s4 + $0x1] ss:$0 sm:$0xff] }
  0x35   :  { %2656 = vmatmul.mubr.f32.vlgmr.msra.gmra.mrb[10].mxu1 %v3183_v35  ;;  %2948 = vmatprep.subr.bf16.mxu0 %v3181_v19 }
  0x36   :  { %2944 = vmatpush3.bf16.msra.mxu1 %v3268_v18  ;;  %2677 = vmatprep.mubr.msk.f32.mxu1 %vm3182_vm1, %v3183_v35 }
  0x37   :  { %2945 = vmatprep.subr.bf16.mxu1 %v3181_v19  ;;  %2631 = vmatmul.mubr.msk.f32.gmra.mrb[12].mxu0 %vm53_vm0, %v39_v30 }
  0x38   :  { %2633 = vmatprep.mubr.msk.f32.mxu0 %vm53_vm0, %v40_v31 }
  0x3a   :  { %2947 = vmatpush3.bf16.msra.mxu1 %v3286_v27 }
  0x3b   :  { %2954 = vmatprep.subr.bf16.mxu1 %v3181_v19  ;;  %2634 = vmatmul.mubr.msk.f32.gmra.mrb[14].mxu0 %vm53_vm0, %v41_v32 }
  0x3c   :  { %2666 = vmatprep.mubr.msk.f32.mxu0 %vm3182_vm1, %v3183_v35 }
  0x3f   :  { %2667 = vmatmul.mubr.f32.vlgmr.msra.gmra.mrb[16].mxu0 %v3183_v35 }
  0x40   :  { %2950 = vmatpush3.bf16.msra.mxu0 %v3317_v36  ;;  %2688 = vmatprep.mubr.msk.f32.mxu0 %vm3182_vm1, %v3183_v35 }
  0x41   :  { %2951 = vmatprep.subr.bf16.mxu0 %v3181_v19 }
  0x44   :  { %2953 = vmatpush3.bf16.msra.mxu0 %v3326_v42 }
  0x45   :  { %2960 = vmatprep.subr.bf16.mxu0 %v3181_v19 }
  0xf0   :  { %v2606_v47 = vpop.f32.mrb[0].mxu1 }
  0xf1   :  { %v3365_v48 = vadd.f32 %v2606_v47, %v2355_v46  ;;  %v262_v49 = vpop.f32.mrb[1].mxu1 }
  0xf2   :  { %v2586_v51 = vpop.f32.mrb[0].mxu0  ;;  %v263_v33 = vadd.f32 %v2355_v46, %v262_v49 }
  0xf3   :  { %v3370_v53 = vadd.f32 %v2586_v51, %v2341_v50  ;;  %v144_v54 = vpop.f32.mrb[1].mxu0 }
  0xf4   :  { %v2609_v52 = vpop.f32.mrb[2].mxu1  ;;  %v145_v15 = vadd.f32 %v2341_v50, %v144_v54 }
  0xf5   :  { %v3372_v55 = vadd.f32 %v2609_v52, %v2355_v46  ;;  %v272_v56 = vpop.f32.mrb[3].mxu1 }
  0xf6   :  { %v3374_v57 = vadd.f32 %v2355_v46, %v272_v56  ;;  %v2589_v58 = vpop.f32.mrb[2].mxu0 }
  0xf7   :  { %v3376_v60 = vadd.f32 %v2589_v58, %v2341_v50  ;;  %v154_v61 = vpop.f32.mrb[3].mxu0 }
  0xf8   :  { %v2612_v59 = vpop.f32.mrb[4].mxu1  ;;  %v3380_v0 = vadd.f32 %v2341_v50, %v154_v61  ;;  %v3428_v61 = vld [vmem:[%s3642_s4 + $0x2] ss:$0 sm:$0xff] }
  0xf9   :  { %v3378_v62 = vadd.f32 %v2612_v59, %v2355_v46  ;;  %v282_v63 = vpop.f32.mrb[5].mxu1 }
  0xfa   :  { %v3382_v1 = vadd.f32 %v2355_v46, %v282_v63  ;;  %v2592_v2 = vpop.f32.mrb[4].mxu0 }
  0xfb   :  { %v3384_v4 = vadd.f32 %v2592_v2, %v2341_v50  ;;  %v164_v5 = vpop.f32.mrb[5].mxu0 }
  0xfc   :  { %v2615_v3 = vpop.f32.mrb[6].mxu1  ;;  %v3388_v8 = vadd.f32 %v2341_v50, %v164_v5 }
  0xfd   :  { %v3386_v6 = vadd.f32 %v2615_v3, %v2355_v46  ;;  %v292_v7 = vpop.f32.mrb[7].mxu1 }
  0xfe   :  { %v3390_v9 = vadd.f32 %v2355_v46, %v292_v7  ;;  %v2595_v11 = vpop.f32.mrb[6].mxu0 }
  0xff   :  { %v3397_v13 = vadd.f32 %v2595_v11, %v2341_v50  ;;  %v174_v14 = vpop.f32.mrb[7].mxu0 }
 0x100   :  { %v525_v12 = vpop.f32.mrb[8].mxu1  ;;  %v3400_v20 = vadd.f32 %v2341_v50, %v174_v14 }
 0x101   :  { %v526_v16 = vadd.f32 %v3395_v10, %v525_v12  ;;  %v2646_v17 = vpop.f32.mrb[9].mxu1 }
 0x102   :  { %v2626_v23 = vpop.f32.mrb[8].mxu0 }
 0x103   :  { %v669_v22 = vadd.f32 %v526_v16, %v145_v15  ;;  %v3405_v24 = vadd.f32 %v2626_v23, %v2369_v21  ;;  %v380_v25 = vpop.f32.mrb[9].mxu0 }
 0x104   :  { %v381_v7 = vadd.f32 %v2369_v21, %v380_v25 }
 0x105   :  { %v2383_v26 = vmul.f32 -1.442695, %v669_v22 }
 0x106   :  { %v2629_v29 = vpop.f32.mrb[10].mxu0 }
 0x107   :  { %3074 = vpow2.f32 %v2383_v26  ;;  %v3412_v31 = vadd.f32 %v2629_v29, %v2369_v21  ;;  %v390_v32 = vpop.f32.mrb[11].mxu0 }
 0x108   :  { %v595_v30 = vpop.f32.mrb[10].mxu1  ;;  %v3415_v38 = vadd.f32 %v2369_v21, %v390_v32 }
 0x109   :  { %v596_v34 = vadd.f32 %v3410_v28, %v595_v30  ;;  %v2657_v37 = vpop.f32.mrb[11].mxu1 }
 0x10a   :  { %v2632_v40 = vpop.f32.mrb[12].mxu0 }
 0x10b   :  { %v676_v39 = vadd.f32 %v596_v34, %v263_v33  ;;  %v3417_v43 = vadd.f32 %v2632_v40, %v2369_v21  ;;  %v400_v44 = vpop.f32.mrb[13].mxu0 }
 0x10c   :  { %v3419_v50 = vadd.f32 %v2369_v21, %v400_v44 }
 0x10d   :  { %v2384_v47 = vmul.f32 -1.442695, %v676_v39 }
 0x10e   :  { %v2635_v51 = vpop.f32.mrb[14].mxu0 }
 0x10f   :  { %3076 = vpow2.f32 %v2384_v47  ;;  %v3421_v52 = vadd.f32 %v2635_v51, %v2369_v21  ;;  %v410_v54 = vpop.f32.mrb[15].mxu0 }
 0x110   :  { %v3423_v46 = vadd.f32 %v2369_v21, %v410_v54 }
 0x111   :  { %v3075_v56 = vpop.eup %3074 }
 0x112   :  { %v673_v49 = vadd.f32 1.0, %v3075_v56  ;;  %v665_v58 = vpop.f32.mrb[16].mxu0 }
 0x113   :  { %v2668_v59 = vpop.f32.mrb[17].mxu0  ;;  %v666_v3 = vadd.f32 %v3428_v61, %v665_v58 }
 0x114   :  { %3078 = vrcp.f32 %v673_v49 }
 0x119   :  { %v3077_v63 = vpop.eup %3076 }
 0x11a   :  { %v680_v2 = vadd.f32 1.0, %v3077_v63 }
 0x11c   :  { %3080 = vrcp.f32 %v680_v2 }
 0x11e   :  { %v3079_v5 = vpop.eup %3078 }
 0x11f   :  { %v683_v11 = vmul.f32 %v3079_v5, %v666_v3 }
 0x121   :  { %v684_v12 = vadd.f32 %v683_v11, %v381_v7 }
 0x123   :  { %3082 = vtanh.f32 %v684_v12 }
 0x126   :  { %v3081_v14 = vpop.eup %3080 }
 0x127   :  { %v686_v15 = vsub.f32 1.0, %v3081_v14  ;;  %v688_v22 = vmul.f32 0.0, %v3081_v14 }
 0x12d   :  { %v3083_v16 = vpop.eup %3082 }
 0x12e   :  { %v687_v17 = vmul.f32 %v3083_v16, %v686_v15 }
 0x130   :  { %v689_v23 = vadd.f32 %v688_v22, %v687_v17 }
 0x132   :  { %690 = vst.msk [vmem:[%s3643_s5] sm:$0xff] %vm53_vm0, %v689_v23  ;;  %2678 = vmatmul.mubr.msk.f32.vlgmr.msra.gmra.mrb[12].mxu1 %vm53_vm0, %v689_v23  ;;  %2689 = vmatmul.mubr.msk.f32.vlgmr.msra.gmra.mrb[18].mxu0 %vm53_vm0, %v689_v23 }
 0x133   :  { %2956 = vmatpush3.bf16.msra.mxu1 %v3323_v41  ;;  %2699 = vmatprep.mubr.msk.f32.mxu1 %vm3182_vm1, %v3183_v35 }
 0x134   :  { %2957 = vmatprep.subr.bf16.mxu1 %v3181_v19  ;;  %2962 = vmatpush3.bf16.msra.mxu0 %v3268_v18 }
 0x135   :  { %2963 = vmatprep.subr.bf16.mxu0 %v3181_v19  ;;  %2710 = vmatprep.mubr.msk.f32.mxu0 %vm3182_vm1, %v3183_v35 }
 0x137   :  { %2959 = vmatpush3.bf16.msra.mxu1 %v3336_v45 }
 0x138   :  { %2966 = vmatprep.subr.bf16.mxu1 %v3181_v19  ;;  %2965 = vmatpush3.bf16.msra.mxu0 %v3286_v27 }
 0x139   :  { %2972 = vmatprep.subr.bf16.mxu0 %v3181_v19 }
 0x13a   :  { %2700 = vmatmul.mubr.msk.f32.vlgmr.msra.gmra.mrb[14].mxu1 %vm53_vm0, %v689_v23 }
 0x13b   :  { %2968 = vmatpush3.bf16.msra.mxu1 %v3317_v36  ;;  %2721 = vmatprep.mubr.msk.f32.mxu1 %vm3182_vm1, %v3183_v35 }
 0x13c   :  { %2969 = vmatprep.subr.bf16.mxu1 %v3181_v19 }
 0x13f   :  { %2971 = vmatpush3.bf16.msra.mxu1 %v3326_v42 }
 0x140   :  { %2978 = vmatprep.subr.bf16.mxu1 %v3181_v19 }
 0x205   :  { %v760_v21 = vpop.f32.mrb[12].mxu1  ;;  %v830_v25 = vpop.f32.mrb[18].mxu0 }
 0x206   :  { %v761_v26 = vadd.f32 %v3395_v10, %v760_v21  ;;  %v831_v29 = vadd.f32 %v3410_v28, %v830_v25  ;;  %v2679_v30 = vpop.f32.mrb[13].mxu1  ;;  %v2690_v32 = vpop.f32.mrb[19].mxu0 }
 0x208   :  { %v904_v33 = vadd.f32 %v761_v26, %v3370_v53  ;;  %v911_v34 = vadd.f32 %v831_v29, %v3365_v48 }
 0x20a   :  { %v2388_v37 = vmul.f32 -1.442695, %v904_v33  ;;  %v2389_v44 = vmul.f32 -1.442695, %v911_v34 }
 0x20c   :  { %3084 = vpow2.f32 %v2388_v37 }
 0x20d   :  { %v900_v39 = vpop.f32.mrb[14].mxu1  ;;  %3086 = vpow2.f32 %v2389_v44 }
 0x20e   :  { %v2701_v40 = vpop.f32.mrb[15].mxu1  ;;  %v901_v49 = vadd.f32 %v3428_v61, %v900_v39 }
 0x216   :  { %v3085_v47 = vpop.eup %3084 }
 0x217   :  { %v908_v51 = vadd.f32 1.0, %v3085_v47  ;;  %v3087_v54 = vpop.eup %3086 }
 0x218   :  { %v915_v56 = vadd.f32 1.0, %v3087_v54 }
 0x219   :  { %3088 = vrcp.f32 %v908_v51 }
 0x21a   :  { %3090 = vrcp.f32 %v915_v56 }
 0x223   :  { %v3089_v58 = vpop.eup %3088 }
 0x224   :  { %v918_v59 = vmul.f32 %v3089_v58, %v901_v49  ;;  %v3091_v48 = vpop.eup %3090 }
 0x225   :  { %v921_v63 = vsub.f32 1.0, %v3091_v48  ;;  %v923_v5 = vmul.f32 %v3091_v48, %v689_v23 }
 0x226   :  { %v919_v53 = vadd.f32 %v918_v59, %v3405_v24 }
 0x228   :  { %3092 = vtanh.f32 %v919_v53 }
 0x232   :  { %v3093_v2 = vpop.eup %3092 }
 0x233   :  { %v922_v3 = vmul.f32 %v3093_v2, %v921_v63 }
 0x235   :  { %v924_v7 = vadd.f32 %v923_v5, %v922_v3 }
 0x237   :  { %925 = vst.msk [vmem:[%s3643_s5 + $0x8] sm:$0xff] %vm53_vm0, %v924_v7  ;;  %2711 = vmatmul.mubr.msk.f32.vlgmr.msra.gmra.mrb[20].mxu0 %vm53_vm0, %v924_v7  ;;  %2722 = vmatmul.mubr.msk.f32.vlgmr.msra.gmra.mrb[16].mxu1 %vm53_vm0, %v924_v7 }
 0x238   :  { %2974 = vmatpush3.bf16.msra.mxu0 %v3323_v41  ;;  %2732 = vmatprep.mubr.msk.f32.mxu0 %vm3182_vm1, %v3183_v35 }
 0x239   :  { %2975 = vmatprep.subr.bf16.mxu0 %v3181_v19  ;;  %2980 = vmatpush3.bf16.msra.mxu1 %v3268_v18 }
 0x23a   :  { %2981 = vmatprep.subr.bf16.mxu1 %v3181_v19  ;;  %2743 = vmatprep.mubr.msk.f32.mxu1 %vm3182_vm1, %v3183_v35 }
 0x23c   :  { %2977 = vmatpush3.bf16.msra.mxu0 %v3336_v45 }
 0x23d   :  { %2984 = vmatprep.subr.bf16.mxu0 %v3181_v19  ;;  %2983 = vmatpush3.bf16.msra.mxu1 %v3286_v27 }
 0x23e   :  { %2990 = vmatprep.subr.bf16.mxu1 %v3181_v19 }
 0x23f   :  { %2733 = vmatmul.mubr.msk.f32.vlgmr.msra.gmra.mrb[22].mxu0 %vm53_vm0, %v924_v7 }
 0x240   :  { %2986 = vmatpush3.bf16.msra.mxu0 %v3317_v36  ;;  %2754 = vmatprep.mubr.msk.f32.mxu0 %vm3182_vm1, %v3183_v35 }
 0x241   :  { %2987 = vmatprep.subr.bf16.mxu0 %v3181_v19 }
 0x244   :  { %2989 = vmatpush3.bf16.msra.mxu0 %v3326_v42 }
 0x245   :  { %2996 = vmatprep.subr.bf16.mxu0 %v3181_v19 }
 0x30a   :  { %v995_v24 = vpop.f32.mrb[20].mxu0  ;;  %v1065_v11 = vpop.f32.mrb[16].mxu1 }
 0x30b   :  { %v996_v12 = vadd.f32 %v3395_v10, %v995_v24  ;;  %v1066_v14 = vadd.f32 %v3410_v28, %v1065_v11  ;;  %v2712_v15 = vpop.f32.mrb[21].mxu0  ;;  %v2723_v16 = vpop.f32.mrb[17].mxu1 }
 0x30d   :  { %v1139_v17 = vadd.f32 %v996_v12, %v3380_v0  ;;  %v1146_v22 = vadd.f32 %v1066_v14, %v3374_v57 }
 0x30f   :  { %v2393_v23 = vmul.f32 -1.442695, %v1139_v17  ;;  %v2394_v26 = vmul.f32 -1.442695, %v1146_v22 }
 0x311   :  { %3094 = vpow2.f32 %v2393_v23 }
 0x312   :  { %v1135_v21 = vpop.f32.mrb[22].mxu0  ;;  %3096 = vpow2.f32 %v2394_v26 }
 0x313   :  { %v2734_v25 = vpop.f32.mrb[23].mxu0  ;;  %v1136_v34 = vadd.f32 %v3428_v61, %v1135_v21 }
 0x31b   :  { %v3095_v29 = vpop.eup %3094 }
 0x31c   :  { %v1143_v30 = vadd.f32 1.0, %v3095_v29  ;;  %v3097_v32 = vpop.eup %3096 }
 0x31d   :  { %v1150_v33 = vadd.f32 1.0, %v3097_v32 }
 0x31e   :  { %3098 = vrcp.f32 %v1143_v30 }
 0x31f   :  { %3100 = vrcp.f32 %v1150_v33 }
 0x328   :  { %v3099_v37 = vpop.eup %3098 }
 0x329   :  { %v1153_v39 = vmul.f32 %v3099_v37, %v1136_v34  ;;  %v3101_v57 = vpop.eup %3100 }
 0x32a   :  { %v1156_v40 = vsub.f32 1.0, %v3101_v57  ;;  %v1158_v51 = vmul.f32 %v3101_v57, %v924_v7 }
 0x32b   :  { %v1154_v0 = vadd.f32 %v1153_v39, %v3415_v38 }
 0x32d   :  { %3102 = vtanh.f32 %v1154_v0 }
 0x337   :  { %v3103_v44 = vpop.eup %3102 }
 0x338   :  { %v1157_v47 = vmul.f32 %v3103_v44, %v1156_v40 }
 0x33a   :  { %v1159_v54 = vadd.f32 %v1158_v51, %v1157_v47 }
 0x33c   :  { %1160 = vst.msk [vmem:[%s3643_s5 + $0x10] sm:$0xff] %vm53_vm0, %v1159_v54  ;;  %2744 = vmatmul.mubr.msk.f32.vlgmr.msra.gmra.mrb[18].mxu1 %vm53_vm0, %v1159_v54  ;;  %2755 = vmatmul.mubr.msk.f32.vlgmr.msra.gmra.mrb[24].mxu0 %vm53_vm0, %v1159_v54 }
 0x33d   :  { %2992 = vmatpush3.bf16.msra.mxu1 %v3323_v41  ;;  %2765 = vmatprep.mubr.msk.f32.mxu1 %vm3182_vm1, %v3183_v35 }
 0x33e   :  { %2993 = vmatprep.subr.bf16.mxu1 %v3181_v19  ;;  %2998 = vmatpush3.bf16.msra.mxu0 %v3268_v18 }
 0x33f   :  { %2999 = vmatprep.subr.bf16.mxu0 %v3181_v19  ;;  %2776 = vmatprep.mubr.msk.f32.mxu0 %vm3182_vm1, %v3183_v35 }
 0x341   :  { %2995 = vmatpush3.bf16.msra.mxu1 %v3336_v45 }
 0x342   :  { %3002 = vmatprep.subr.bf16.mxu1 %v3181_v19  ;;  %3001 = vmatpush3.bf16.msra.mxu0 %v3286_v27 }
 0x343   :  { %3008 = vmatprep.subr.bf16.mxu0 %v3181_v19 }
 0x344   :  { %2766 = vmatmul.mubr.msk.f32.vlgmr.msra.gmra.mrb[20].mxu1 %vm53_vm0, %v1159_v54 }
 0x345   :  { %3004 = vmatpush3.bf16.msra.mxu1 %v3317_v36  ;;  %2787 = vmatprep.mubr.msk.f32.mxu1 %vm3182_vm1, %v3183_v35 }
 0x346   :  { %3005 = vmatprep.subr.bf16.mxu1 %v3181_v19 }
 0x349   :  { %3007 = vmatpush3.bf16.msra.mxu1 %v3326_v42 }
 0x34a   :  { %3014 = vmatprep.subr.bf16.mxu1 %v3181_v19 }
 0x40f   :  { %v1230_v38 = vpop.f32.mrb[18].mxu1  ;;  %v1300_v56 = vpop.f32.mrb[24].mxu0 }
 0x410   :  { %v1231_v49 = vadd.f32 %v3395_v10, %v1230_v38  ;;  %v1301_v58 = vadd.f32 %v3410_v28, %v1300_v56  ;;  %v2745_v59 = vpop.f32.mrb[19].mxu1  ;;  %v2756_v53 = vpop.f32.mrb[25].mxu0 }
 0x412   :  { %v1374_v48 = vadd.f32 %v1231_v49, %v3376_v60  ;;  %v1381_v63 = vadd.f32 %v1301_v58, %v3372_v55 }
 0x414   :  { %v2398_v2 = vmul.f32 -1.442695, %v1374_v48  ;;  %v2399_v7 = vmul.f32 -1.442695, %v1381_v63 }
 0x416   :  { %3104 = vpow2.f32 %v2398_v2 }
 0x417   :  { %v1370_v3 = vpop.f32.mrb[20].mxu1  ;;  %3106 = vpow2.f32 %v2399_v7 }
 0x418   :  { %v2767_v5 = vpop.f32.mrb[21].mxu1  ;;  %v1371_v15 = vadd.f32 %v3428_v61, %v1370_v3 }
 0x420   :  { %v3105_v24 = vpop.eup %3104 }
 0x421   :  { %v1378_v11 = vadd.f32 1.0, %v3105_v24  ;;  %v3107_v12 = vpop.eup %3106 }
 0x422   :  { %v1385_v14 = vadd.f32 1.0, %v3107_v12 }
 0x423   :  { %3108 = vrcp.f32 %v1378_v11 }
 0x424   :  { %3110 = vrcp.f32 %v1385_v14 }
 0x42d   :  { %v3109_v16 = vpop.eup %3108 }
 0x42e   :  { %v1388_v17 = vmul.f32 %v3109_v16, %v1371_v15  ;;  %v3111_v55 = vpop.eup %3110 }
 0x42f   :  { %v1391_v22 = vsub.f32 1.0, %v3111_v55  ;;  %v1393_v25 = vmul.f32 %v3111_v55, %v1159_v54 }
 0x430   :  { %v1389_v60 = vadd.f32 %v1388_v17, %v3412_v31 }
 0x432   :  { %3112 = vtanh.f32 %v1389_v60 }
 0x43c   :  { %v3113_v23 = vpop.eup %3112 }
 0x43d   :  { %v1392_v21 = vmul.f32 %v3113_v23, %v1391_v22 }
 0x43f   :  { %v1394_v26 = vadd.f32 %v1393_v25, %v1392_v21 }
 0x441   :  { %1395 = vst.msk [vmem:[%s3643_s5 + $0x18] sm:$0xff] %vm53_vm0, %v1394_v26  ;;  %2777 = vmatmul.mubr.msk.f32.vlgmr.msra.gmra.mrb[26].mxu0 %vm53_vm0, %v1394_v26  ;;  %2788 = vmatmul.mubr.msk.f32.vlgmr.msra.gmra.mrb[22].mxu1 %vm53_vm0, %v1394_v26 }
 0x442   :  { %3010 = vmatpush3.bf16.msra.mxu0 %v3323_v41  ;;  %2798 = vmatprep.mubr.msk.f32.mxu0 %vm3182_vm1, %v3183_v35 }
 0x443   :  { %3011 = vmatprep.subr.bf16.mxu0 %v3181_v19  ;;  %3016 = vmatpush3.bf16.msra.mxu1 %v3268_v18 }
 0x444   :  { %3017 = vmatprep.subr.bf16.mxu1 %v3181_v19  ;;  %2809 = vmatprep.mubr.msk.f32.mxu1 %vm3182_vm1, %v3183_v35 }
 0x446   :  { %3013 = vmatpush3.bf16.msra.mxu0 %v3336_v45 }
 0x447   :  { %3020 = vmatprep.subr.bf16.mxu0 %v3181_v19  ;;  %3019 = vmatpush3.bf16.msra.mxu1 %v3286_v27 }
 0x448   :  { %3026 = vmatprep.subr.bf16.mxu1 %v3181_v19 }
 0x449   :  { %2799 = vmatmul.mubr.msk.f32.vlgmr.msra.gmra.mrb[28].mxu0 %vm53_vm0, %v1394_v26 }
 0x44a   :  { %3022 = vmatpush3.bf16.msra.mxu0 %v3317_v36  ;;  %2820 = vmatprep.mubr.msk.f32.mxu0 %vm3182_vm1, %v3183_v35 }
 0x44b   :  { %3023 = vmatprep.subr.bf16.mxu0 %v3181_v19 }
 0x44e   :  { %3025 = vmatpush3.bf16.msra.mxu0 %v3326_v42 }
 0x44f   :  { %3032 = vmatprep.subr.bf16.mxu0 %v3181_v19 }
 0x514   :  { %v1465_v31 = vpop.f32.mrb[26].mxu0  ;;  %v1535_v29 = vpop.f32.mrb[22].mxu1 }
 0x515   :  { %v1466_v30 = vadd.f32 %v3395_v10, %v1465_v31  ;;  %v1536_v32 = vadd.f32 %v3410_v28, %v1535_v29  ;;  %v2778_v33 = vpop.f32.mrb[27].mxu0  ;;  %v2789_v34 = vpop.f32.mrb[23].mxu1 }
 0x517   :  { %v1609_v37 = vadd.f32 %v1466_v30, %v3388_v8  ;;  %v1616_v39 = vadd.f32 %v1536_v32, %v3382_v1 }
 0x519   :  { %v2403_v0 = vmul.f32 -1.442695, %v1609_v37  ;;  %v2404_v44 = vmul.f32 -1.442695, %v1616_v39 }
 0x51b   :  { %3114 = vpow2.f32 %v2403_v0 }
 0x51c   :  { %v1605_v57 = vpop.f32.mrb[28].mxu0  ;;  %3116 = vpow2.f32 %v2404_v44 }
 0x51d   :  { %v2800_v40 = vpop.f32.mrb[29].mxu0  ;;  %v1606_v56 = vadd.f32 %v3428_v61, %v1605_v57 }
 0x525   :  { %v3115_v47 = vpop.eup %3114 }
 0x526   :  { %v1613_v51 = vadd.f32 1.0, %v3115_v47  ;;  %v3117_v54 = vpop.eup %3116 }
 0x527   :  { %v1620_v38 = vadd.f32 1.0, %v3117_v54 }
 0x528   :  { %3118 = vrcp.f32 %v1613_v51 }
 0x529   :  { %3120 = vrcp.f32 %v1620_v38 }
 0x532   :  { %v3119_v49 = vpop.eup %3118 }
 0x533   :  { %v1623_v58 = vmul.f32 %v3119_v49, %v1606_v56  ;;  %v3121_v1 = vpop.eup %3120 }
 0x534   :  { %v1626_v59 = vsub.f32 1.0, %v3121_v1  ;;  %v1628_v63 = vmul.f32 %v3121_v1, %v1394_v26 }
 0x535   :  { %v1624_v8 = vadd.f32 %v1623_v58, %v3419_v50 }
 0x537   :  { %3122 = vtanh.f32 %v1624_v8 }
 0x541   :  { %v3123_v53 = vpop.eup %3122 }
 0x542   :  { %v1627_v48 = vmul.f32 %v3123_v53, %v1626_v59 }
 0x544   :  { %v1629_v2 = vadd.f32 %v1628_v63, %v1627_v48 }
 0x546   :  { %1630 = vst.msk [vmem:[%s3643_s5 + $0x20] sm:$0xff] %vm53_vm0, %v1629_v2  ;;  %2810 = vmatmul.mubr.msk.f32.vlgmr.msra.gmra.mrb[24].mxu1 %vm53_vm0, %v1629_v2  ;;  %2821 = vmatmul.mubr.msk.f32.vlgmr.msra.gmra.mrb[30].mxu0 %vm53_vm0, %v1629_v2 }
 0x547   :  { %3028 = vmatpush3.bf16.msra.mxu1 %v3323_v41  ;;  %2831 = vmatprep.mubr.msk.f32.mxu1 %vm3182_vm1, %v3183_v35 }
 0x548   :  { %3029 = vmatprep.subr.bf16.mxu1 %v3181_v19  ;;  %3034 = vmatpush3.bf16.msra.mxu0 %v3268_v18 }
 0x549   :  { %3035 = vmatprep.subr.bf16.mxu0 %v3181_v19  ;;  %2842 = vmatprep.mubr.msk.f32.mxu0 %vm3182_vm1, %v3183_v35 }
 0x54b   :  { %3031 = vmatpush3.bf16.msra.mxu1 %v3336_v45 }
 0x54c   :  { %3038 = vmatprep.subr.bf16.mxu1 %v3181_v19  ;;  %3037 = vmatpush3.bf16.msra.mxu0 %v3286_v27 }
 0x54d   :  { %3044 = vmatprep.subr.bf16.mxu0 %v3181_v19 }
 0x54e   :  { %2832 = vmatmul.mubr.msk.f32.vlgmr.msra.gmra.mrb[26].mxu1 %vm53_vm0, %v1629_v2 }
 0x54f   :  { %3040 = vmatpush3.bf16.msra.mxu1 %v3317_v36  ;;  %2853 = vmatprep.mubr.msk.f32.mxu1 %vm3182_vm1, %v3183_v35 }
 0x550   :  { %3041 = vmatprep.subr.bf16.mxu1 %v3181_v19 }
 0x553   :  { %3043 = vmatpush3.bf16.msra.mxu1 %v3326_v42 }
 0x554   :  { %3050 = vmatprep.subr.bf16.mxu1 %v3181_v19 }
 0x619   :  { %v1700_v50 = vpop.f32.mrb[24].mxu1  ;;  %v1770_v3 = vpop.f32.mrb[30].mxu0 }
 0x61a   :  { %v1701_v5 = vadd.f32 %v3395_v10, %v1700_v50  ;;  %v1771_v7 = vadd.f32 %v3410_v28, %v1770_v3  ;;  %v2811_v24 = vpop.f32.mrb[25].mxu1  ;;  %v2822_v11 = vpop.f32.mrb[31].mxu0 }
 0x61c   :  { %v1844_v12 = vadd.f32 %v1701_v5, %v3384_v4  ;;  %v1851_v14 = vadd.f32 %v1771_v7, %v3378_v62 }
 0x61e   :  { %v2408_v15 = vmul.f32 -1.442695, %v1844_v12  ;;  %v2409_v60 = vmul.f32 -1.442695, %v1851_v14 }
 0x620   :  { %3124 = vpow2.f32 %v2408_v15 }
 0x621   :  { %v1840_v16 = vpop.f32.mrb[26].mxu1  ;;  %3126 = vpow2.f32 %v2409_v60 }
 0x622   :  { %v2833_v17 = vpop.f32.mrb[27].mxu1  ;;  %v1841_v25 = vadd.f32 %v3428_v61, %v1840_v16 }
 0x62a   :  { %v3125_v55 = vpop.eup %3124 }
 0x62b   :  { %v1848_v22 = vadd.f32 1.0, %v3125_v55  ;;  %v3127_v23 = vpop.eup %3126 }
 0x62c   :  { %v1855_v21 = vadd.f32 1.0, %v3127_v23 }
 0x62d   :  { %3128 = vrcp.f32 %v1848_v22 }
 0x62e   :  { %3130 = vrcp.f32 %v1855_v21 }
 0x637   :  { %v3129_v26 = vpop.eup %3128 }
 0x638   :  { %v1858_v31 = vmul.f32 %v3129_v26, %v1841_v25  ;;  %v3131_v62 = vpop.eup %3130 }
 0x639   :  { %v1861_v29 = vsub.f32 1.0, %v3131_v62  ;;  %v1863_v33 = vmul.f32 %v3131_v62, %v1629_v2 }
 0x63a   :  { %v1859_v4 = vadd.f32 %v1858_v31, %v3417_v43 }
 0x63c   :  { %3132 = vtanh.f32 %v1859_v4 }
 0x646   :  { %v3133_v30 = vpop.eup %3132 }
 0x647   :  { %v1862_v32 = vmul.f32 %v3133_v30, %v1861_v29 }
 0x649   :  { %v1864_v34 = vadd.f32 %v1863_v33, %v1862_v32 }
 0x64b   :  { %1865 = vst.msk [vmem:[%s3643_s5 + $0x28] sm:$0xff] %vm53_vm0, %v1864_v34  ;;  %2843 = vmatmul.mubr.msk.f32.vlgmr.msra.gmra.mrb[32].mxu0 %vm53_vm0, %v1864_v34  ;;  %2854 = vmatmul.mubr.msk.f32.vlgmr.msra.gmra.mrb[28].mxu1 %vm53_vm0, %v1864_v34 }
 0x64c   :  { %3046 = vmatpush3.bf16.msra.mxu0 %v3323_v41  ;;  %2864 = vmatprep.mubr.msk.f32.mxu0 %vm3182_vm1, %v3183_v35 }
 0x64d   :  { %3047 = vmatprep.subr.bf16.mxu0 %v3181_v19  ;;  %3052 = vmatpush3.bf16.msra.mxu1 %v3268_v18 }
 0x64e   :  { %3053 = vmatprep.subr.bf16.mxu1 %v3181_v19  ;;  %2875 = vmatprep.mubr.msk.f32.mxu1 %vm3182_vm1, %v3183_v35 }
 0x650   :  { %3049 = vmatpush3.bf16.msra.mxu0 %v3336_v45 }
 0x651   :  { %3056 = vmatprep.subr.bf16.mxu0 %v3181_v19  ;;  %3055 = vmatpush3.bf16.msra.mxu1 %v3286_v27 }
 0x652   :  { %3062 = vmatprep.subr.bf16.mxu1 %v3181_v19 }
 0x653   :  { %2865 = vmatmul.mubr.msk.f32.vlgmr.msra.gmra.mrb[34].mxu0 %vm53_vm0, %v1864_v34 }
 0x654   :  { %3058 = vmatpush3.bf16.msra.mxu0 %v3317_v36  ;;  %2886 = vmatprep.mubr.msk.f32.mxu0 %vm3182_vm1, %v3183_v35 }
 0x655   :  { %3059 = vmatprep.subr.bf16.mxu0 %v3181_v19 }
 0x658   :  { %3061 = vmatpush3.bf16.msra.mxu0 %v3326_v42 }
 0x71e   :  { %v1935_v18 = vpop.f32.mrb[32].mxu0  ;;  %v2005_v43 = vpop.f32.mrb[28].mxu1 }
 0x71f   :  { %v1936_v37 = vadd.f32 %v3395_v10, %v1935_v18  ;;  %v2006_v39 = vadd.f32 %v3410_v28, %v2005_v43  ;;  %v2844_v27 = vpop.f32.mrb[33].mxu0  ;;  %v2855_v0 = vpop.f32.mrb[29].mxu1 }
 0x721   :  { %v2079_v57 = vadd.f32 %v1936_v37, %v3400_v20  ;;  %v2086_v40 = vadd.f32 %v2006_v39, %v3390_v9 }
 0x723   :  { %v2413_v36 = vmul.f32 -1.442695, %v2079_v57  ;;  %v2414_v51 = vmul.f32 -1.442695, %v2086_v40 }
 0x725   :  { %3134 = vpow2.f32 %v2413_v36 }
 0x726   :  { %v2075_v44 = vpop.f32.mrb[34].mxu0  ;;  %3136 = vpow2.f32 %v2414_v51 }
 0x727   :  { %v2866_v47 = vpop.f32.mrb[35].mxu0  ;;  %v2076_v49 = vadd.f32 %v3428_v61, %v2075_v44 }
 0x72f   :  { %v3135_v54 = vpop.eup %3134 }
 0x730   :  { %v2083_v42 = vadd.f32 1.0, %v3135_v54  ;;  %v3137_v38 = vpop.eup %3136 }
 0x731   :  { %v2090_v56 = vadd.f32 1.0, %v3137_v38 }
 0x732   :  { %3138 = vrcp.f32 %v2083_v42 }
 0x733   :  { %3140 = vrcp.f32 %v2090_v56 }
 0x73c   :  { %v3139_v58 = vpop.eup %3138 }
 0x73d   :  { %v2093_v8 = vmul.f32 %v3139_v58, %v2076_v49  ;;  %v3141_v9 = vpop.eup %3140 }
 0x73e   :  { %v2096_v1 = vsub.f32 1.0, %v3141_v9  ;;  %v2098_v48 = vmul.f32 %v3141_v9, %v1864_v34 }
 0x73f   :  { %v2094_v20 = vadd.f32 %v2093_v8, %v3423_v46 }
 0x741   :  { %3142 = vtanh.f32 %v2094_v20 }
 0x74b   :  { %v3143_v59 = vpop.eup %3142 }
 0x74c   :  { %v2097_v53 = vmul.f32 %v3143_v59, %v2096_v1 }
 0x74e   :  { %v2099_v63 = vadd.f32 %v2098_v48, %v2097_v53 }
 0x750   :  { %2100 = vst.msk [vmem:[%s3643_s5 + $0x30] sm:$0xff] %vm53_vm0, %v2099_v63  ;;  %2876 = vmatmul.mubr.msk.f32.vlgmr.msra.gmra.mrb[30].mxu1 %vm53_vm0, %v2099_v63  ;;  %2887 = vmatmul.mubr.msk.f32.vlgmr.msra.gmra.mrb[36].mxu0 %vm53_vm0, %v2099_v63 }
 0x751   :  { %3064 = vmatpush3.bf16.msra.mxu1 %v3323_v41  ;;  %2897 = vmatprep.mubr.msk.f32.mxu1 %vm3182_vm1, %v3183_v35 }
 0x752   :  { %3065 = vmatprep.subr.bf16.mxu1 %v3181_v19 }
 0x755   :  { %3067 = vmatpush3.bf16.msra.mxu1 %v3336_v45 }
 0x758   :  { %2898 = vmatmul.mubr.msk.f32.vlgmr.msra.gmra.mrb[32].mxu1 %vm53_vm0, %v2099_v63 }
 0x823   :  { %v2170_v46 = vpop.f32.mrb[30].mxu1  ;;  %v2240_v2 = vpop.f32.mrb[36].mxu0 }
 0x824   :  { %v2171_v50 = vadd.f32 %v3395_v10, %v2170_v46  ;;  %v2241_v3 = vadd.f32 %v3410_v28, %v2240_v2  ;;  %v2877_v5 = vpop.f32.mrb[31].mxu1  ;;  %v2888_v7 = vpop.f32.mrb[37].mxu0 }
 0x826   :  { %v2314_v24 = vadd.f32 %v2171_v50, %v3397_v13  ;;  %v2321_v41 = vadd.f32 %v2241_v3, %v3386_v6 }
 0x828   :  { %v2418_v11 = vmul.f32 -1.442695, %v2314_v24  ;;  %v2419_v12 = vmul.f32 -1.442695, %v2321_v41 }
 0x82a   :  { %3144 = vpow2.f32 %v2418_v11 }
 0x82b   :  { %v2310_v35 = vpop.f32.mrb[32].mxu1  ;;  %3146 = vpow2.f32 %v2419_v12 }
 0x82c   :  { %v2899_v19 = vpop.f32.mrb[33].mxu1  ;;  %v2311_v10 = vadd.f32 %v3428_v61, %v2310_v35 }
 0x834   :  { %v3145_v45 = vpop.eup %3144 }
 0x835   :  { %v2318_v14 = vadd.f32 1.0, %v3145_v45  ;;  %v3147_v15 = vpop.eup %3146 }
 0x836   :  { %v2325_v16 = vadd.f32 1.0, %v3147_v15 }
 0x837   :  { %3148 = vrcp.f32 %v2318_v14 }
 0x838   :  { %3150 = vrcp.f32 %v2325_v16 }
 0x841   :  { %v3149_v28 = vpop.eup %3148 }
 0x842   :  { %v2328_v17 = vmul.f32 %v3149_v28, %v2311_v10  ;;  %v3151_v6 = vpop.eup %3150 }
 0x843   :  { %v2331_v60 = vsub.f32 1.0, %v3151_v6  ;;  %v2333_v22 = vmul.f32 %v3151_v6, %v2099_v63 }
 0x844   :  { %v2329_v13 = vadd.f32 %v2328_v17, %v3421_v52 }
 0x846   :  { %3152 = vtanh.f32 %v2329_v13 }
 0x850   :  { %v3153_v55 = vpop.eup %3152 }
 0x851   :  { %v2332_v23 = vmul.f32 %v3153_v55, %v2331_v60 }
 0x853   :  { %v2334_v21 = vadd.f32 %v2333_v22, %v2332_v23 }
 0x855   :  { %2335 = vst.msk [vmem:[%s3643_s5 + $0x38] sm:$0xff] %vm53_vm0, %v2334_v21 }
 0x856   :  { %2340 = vsyncpa [#allocation3], 1 }

</bundles_post_ra>
